<compile_context>
chip_gen: v6e
topology: v6e:2x2x1
jax: 0.10.0
libtpu: 0.0.40
codegen_flags: <defaults>
</compile_context>

<pallas_src>
import jax
import jax.numpy as jnp
from jax import lax
from jax.experimental import pallas as pl
from jax.experimental.pallas import tpu as pltpu

NUM_HEADS = 12
THRESHOLD = 0.0
LN_EPS = 1e-5
LANE = 128


def _make_gcn_agg_kernel(heads_per_step):
    """Kernel factory: `heads_per_step` attention maps are streamed per grid
    step and folded into the VMEM agg accumulator; adjacency / 2x GCN / pool /
    MLP epilogue runs on the last step."""

    def kernel(
        agg_w_ref, agg_b_ref,                                    # SMEM: (12,), (1,)
        attn_ref,                                                # VMEM: (hps, N, N), target-major
        ew_ref, x_ref, onehot_ref, invcnt_ref,                   # resident VMEM operands
        g1w_ref, g1b_ref, g2w_ref, g2b_ref,                      # GCN params
        l1w_ref, l1b_ref, ln_g_ref, ln_b_ref, l2w_ref, l2b_ref,  # head params
        out_ref,                                                 # output [B, out_ch]
        agg_ref,                                                 # VMEM scratch (N, N) f32
        xw1_ref,                                                 # VMEM scratch (N, H) f32
    ):
        f32 = jnp.float32
        c = pl.program_id(0)
        base = c * heads_per_step

        # ---- Conv2d(12, 1, k=1): streamed weighted sum of attention maps ----
        contrib = attn_ref[0].astype(f32) * agg_w_ref[base]
        for h in range(1, heads_per_step):
            contrib = contrib + attn_ref[h].astype(f32) * agg_w_ref[base + h]

        @pl.when(c == 0)
        def _():
            # init from the first head group (+ bias): saves a zero-fill pass
            agg_ref[...] = contrib + agg_b_ref[0]
            # head-independent X @ W1 hoisted here so its MXU work overlaps
            # the attn DMAs of the remaining grid steps
            xw1_ref[...] = jnp.dot(x_ref[...], g1w_ref[...],
                                   preferred_element_type=f32)

        @pl.when(c != 0)
        def _():
            agg_ref[...] = agg_ref[...] + contrib

        # ---- epilogue: adjacency, 2x GCN, pool, MLP head ----
        @pl.when(c == pl.num_programs(0) - 1)
        def _():
            n = agg_ref.shape[0]
            mask = agg_ref[...] > THRESHOLD
            # NOTE: a precomputed int8 diag mask could replace the two int32
            # iota planes if profiling shows this VPU chain matters (v6e/v5e).
            row = lax.broadcasted_iota(jnp.int32, (n, n), 0)
            col = lax.broadcasted_iota(jnp.int32, (n, n), 1)
            diag = row == col
            # Build A_t (target-major: thresholded edge weight for selected
            # edges, else remaining self-loop) IN PLACE in agg_ref so only one
            # N^2 f32 buffer stays live through the epilogue.
            agg_ref[...] = jnp.where(mask, ew_ref[...],
                                     jnp.where(diag, f32(1.0), f32(0.0)))

            # symmetric GCN normalization; deg is a plain lane reduce -> [N,1]
            deg = jnp.sum(agg_ref[...], axis=1, keepdims=True)
            dis = jnp.where(deg > 0.0, lax.rsqrt(deg), 0.0)

            # bf16 operands for the N x N x H MXU contractions (f32 accumulate)
            a_bf = agg_ref[...].astype(jnp.bfloat16)

            def propagate(xw):
                # out[t, h] = dis[t] * sum_s A_t[t, s] * dis[s] * xw[s, h]
                return dis * jnp.dot(a_bf, (dis * xw).astype(jnp.bfloat16),
                                     preferred_element_type=f32)

            # GCNConv 1 + ReLU  (xw1 precomputed at step 0)
            h1 = jnp.maximum(propagate(xw1_ref[...]) + g1b_ref[...], 0.0)

            # GCNConv 2
            xw2 = jnp.dot(h1, g2w_ref[...], preferred_element_type=f32)
            h2 = propagate(xw2) + g2b_ref[...]

            # global_mean_pool via one-hot matmul (padded nodes have zero one-hot)
            pooled = (jnp.dot(onehot_ref[...], h2, preferred_element_type=f32)
                      * invcnt_ref[...])

            # head: Linear -> ReLU -> LayerNorm -> Linear
            z = jnp.maximum(
                jnp.dot(pooled, l1w_ref[...], preferred_element_type=f32)
                + l1b_ref[...], 0.0)
            mu = jnp.mean(z, axis=-1, keepdims=True)
            var = jnp.mean((z - mu) ** 2, axis=-1, keepdims=True)
            zn = (z - mu) * lax.rsqrt(var + LN_EPS) * ln_g_ref[...] + ln_b_ref[...]
            out_ref[...] = (jnp.dot(zn, l2w_ref[...], preferred_element_type=f32)
                            + l2b_ref[...]).astype(out_ref.dtype)

    return kernel


def _round_up(v, m):
    return (v + m - 1) // m * m


def _device_kind():
    try:
        return jax.devices()[0].device_kind.lower()
    except Exception:
        return ""


def _vmem_capacity_bytes():
    try:
        return int(pltpu.get_tpu_info().vmem_capacity_bytes)
    except Exception:
        return 128 << 20   # conservative fallback (v5e/v6e physical)


def gcn_with_agg_forward(x, attn, edge_weight_dense, batch_idx, params,
                         num_graphs, *, attn_dtype=jnp.bfloat16):
    """Fused forward.  attn_dtype defaults to bfloat16 (halves the dominant
    attn HBM stream); accumulation and the GCN epilogue accumulate in f32."""
    n, _ = x.shape
    hid = params["g1w"].shape[1]
    out_ch = params["l2w"].shape[1]
    n_pad = max(_round_up(n, LANE), LANE)

    # ---- generation-aware tuning knobs ----
    kind = _device_kind()
    is_v5 = "v5" in kind
    is_v7 = ("v7" in kind) or ("tpu7" in kind)
    heads_per_step = 2 if (is_v7 and NUM_HEADS % 2 == 0) else 1
    num_steps = NUM_HEADS // heads_per_step
    attn_buffers = 3 if is_v5 else 2          # hide v5e's slower HBM
    # TODO(synk): on v7x, shard the attn streaming phase across both
    # TensorCores with a row-block "parallel" grid axis, and row-tile the attn
    # block for N_pad >~ 2048 so the whole-map block still fits 64 MiB VMEM.

    # ---- layout plumbing in the wrapper: target-major + lane-aligned pad ----
    attn_t = jnp.swapaxes(attn, 1, 2)          # [12, t, s]
    ew_t = edge_weight_dense.T                 # [t, s]
    onehot = (jnp.arange(num_graphs, dtype=jnp.int32)[:, None]
              == batch_idx[None, :]).astype(jnp.float32)            # [B, N]
    if n_pad != n:
        dn = n_pad - n
        attn_t = jnp.pad(attn_t, ((0, 0), (0, dn), (0, dn)))
        ew_t = jnp.pad(ew_t, ((0, dn), (0, dn)))
        x = jnp.pad(x, ((0, dn), (0, 0)))
        onehot = jnp.pad(onehot, ((0, 0), (0, dn)))
    counts = jnp.sum(onehot, axis=1, keepdims=True)
    invcnt = jnp.where(counts > 0, 1.0 / counts, 0.0)
    attn_t = attn_t.astype(attn_dtype)
    ew_t = ew_t.astype(jnp.float32)
    x = x.astype(jnp.float32)

    # ---- specs ----
    smem = pl.BlockSpec(memory_space=pltpu.MemorySpace.SMEM)

    def _whole(arr):
        # whole-array VMEM block, constant index map -> fetched once and kept
        # resident; single-buffered (double-buffering constant blocks only
        # doubles their VMEM footprint with zero perf benefit).
        nd = arr.ndim
        return pl.BlockSpec(arr.shape, lambda *_, _nd=nd: (0,) * _nd,
                            pipeline_mode=pl.Buffered(1))

    # one head group per grid step; pipelined by the runtime.
    attn_spec = pl.BlockSpec((heads_per_step, n_pad, n_pad),
                             lambda c: (c, 0, 0),
                             pipeline_mode=pl.Buffered(attn_buffers))

    resident_ops = (
        ew_t, x, onehot, invcnt,
        params["g1w"], params["g1b"], params["g2w"], params["g2b"],
        params["l1w"], params["l1b"], params["ln_g"], params["ln_b"],
        params["l2w"], params["l2b"],
    )
    in_specs = [smem, smem, attn_spec] + [_whole(a) for a in resident_ops]
    out_specs = pl.BlockSpec((num_graphs, out_ch), lambda c: (0, 0))

    # ---- explicit VMEM budget from the actual buffers ----
    attn_block = heads_per_step * n_pad * n_pad * jnp.dtype(attn_dtype).itemsize
    resident_bytes = sum(int(a.size) * a.dtype.itemsize for a in resident_ops)
    scratch_bytes = n_pad * n_pad * 4 + n_pad * hid * 4
    epilogue_tmp_bytes = 3 * n_pad * n_pad * 4   # mask/where temps + bf16 A_t + iota
    vmem_need = (attn_buffers * attn_block
                 + resident_bytes                # single-buffered residents
                 + scratch_bytes
                 + epilogue_tmp_bytes
                 + 2 * num_graphs * out_ch * 4
                 + (2 << 20))                    # headroom
    vmem_cap = _vmem_capacity_bytes()            # per-generation capacity
    vmem_limit = int(min(max(vmem_need, 16 << 20),
                         max(vmem_cap - (16 << 20), 32 << 20)))

    grid_spec = pltpu.PrefetchScalarGridSpec(
        num_scalar_prefetch=0,
        grid=(num_steps,),
        in_specs=in_specs,
        out_specs=out_specs,
        scratch_shapes=[pltpu.VMEM((n_pad, n_pad), jnp.float32),
                        pltpu.VMEM((n_pad, hid), jnp.float32)],
    )

    return pl.pallas_call(
        _make_gcn_agg_kernel(heads_per_step),
        out_shape=jax.ShapeDtypeStruct((num_graphs, out_ch), jnp.float32),
        grid_spec=grid_spec,
        compiler_params=pltpu.CompilerParams(
            dimension_semantics=("arbitrary",),   # head axis is a reduction
            vmem_limit_bytes=vmem_limit,
        ),
    )(
        params["agg_w"], params["agg_b"], attn_t, *resident_ops,
    )


def reference_forward(x, attn, edge_weight_dense, batch_idx, params, num_graphs):
    """Pure-JAX reference mirroring the PyTorch forward semantics."""
    agg = jnp.tensordot(params["agg_w"], attn, axes=1) + params["agg_b"][0]
    mask = agg > THRESHOLD
    n = x.shape[0]
    eye = jnp.eye(n, dtype=bool)
    a_hat = jnp.where(mask, edge_weight_dense, jnp.where(eye, 1.0, 0.0))
    deg = a_hat.sum(axis=0)
    dis = jnp.where(deg > 0, 1.0 / jnp.sqrt(deg), 0.0)
    norm = dis[:, None] * a_hat * dis[None, :]
    h1 = jax.nn.relu(norm.T @ (x @ params["g1w"]) + params["g1b"])
    h2 = norm.T @ (h1 @ params["g2w"]) + params["g2b"]
    onehot = (jnp.arange(num_graphs)[:, None] == batch_idx[None, :]).astype(jnp.float32)
    pooled = onehot @ h2 / onehot.sum(axis=1, keepdims=True)
    z = jax.nn.relu(pooled @ params["l1w"] + params["l1b"])
    mu = z.mean(-1, keepdims=True)
    var = ((z - mu) ** 2).mean(-1, keepdims=True)
    zn = (z - mu) / jnp.sqrt(var + LN_EPS) * params["ln_g"] + params["ln_b"]
    return zn @ params["l2w"] + params["l2b"]


if __name__ == "__main__":
    # small shapes: N nodes, in_ch, hidden_ch, out_ch, num_graphs
    N, IN_CH, HID, OUT_CH, B = 16, 8, 32, 4, 2

    key = jax.random.PRNGKey(0)
    ks = jax.random.split(key, 16)

    # deterministic synthetic parameters (shapes per module __init__)
    params = {
        "agg_w": jax.random.normal(ks[0], (NUM_HEADS,), jnp.float32) * 0.3,
        "agg_b": jax.random.normal(ks[1], (1,), jnp.float32) * 0.1,
        "g1w": jax.random.normal(ks[2], (IN_CH, HID), jnp.float32) * 0.2,
        "g1b": jax.random.normal(ks[3], (1, HID), jnp.float32) * 0.05,
        "g2w": jax.random.normal(ks[4], (HID, HID), jnp.float32) * 0.2,
        "g2b": jax.random.normal(ks[5], (1, HID), jnp.float32) * 0.05,
        "l1w": jax.random.normal(ks[6], (HID, HID), jnp.float32) * 0.2,
        "l1b": jax.random.normal(ks[7], (1, HID), jnp.float32) * 0.05,
        "ln_g": 1.0 + 0.1 * jax.random.normal(ks[8], (1, HID), jnp.float32),
        "ln_b": 0.1 * jax.random.normal(ks[9], (1, HID), jnp.float32),
        "l2w": jax.random.normal(ks[10], (HID, OUT_CH), jnp.float32) * 0.2,
        "l2b": jax.random.normal(ks[11], (1, OUT_CH), jnp.float32) * 0.05,
    }

    # deterministic inputs
    x = jax.random.normal(ks[12], (N, IN_CH), jnp.float32)
    attn = jax.random.normal(ks[13], (NUM_HEADS, N, N), jnp.float32)
    # dense edge-weight matrix (stands in for the flat per-edge weight vector)
    edge_weight_dense = jax.random.uniform(
        ks[14], (N, N), jnp.float32, minval=0.5, maxval=1.5)
    batch_idx = jnp.concatenate(
        [jnp.zeros((N // 2,), jnp.int32), jnp.ones((N - N // 2,), jnp.int32)])

    out = gcn_with_agg_forward(x, attn, edge_weight_dense, batch_idx, params, B)
    out = jax.block_until_ready(out)

    # The kernel streams attn in bf16 before the hard ">0" threshold; mirror
    # that quantization in the reference so edge selection matches exactly.
    attn_q = attn.astype(jnp.bfloat16).astype(jnp.float32)
    ref = reference_forward(x, attn_q, edge_weight_dense, batch_idx, params, B)
    if not jnp.allclose(out, ref, rtol=5e-2, atol=5e-2):
        raise AssertionError(f"mismatch: kernel={out}, ref={ref}")

    # TODO(synk): the second tuple element of the PyTorch forward is `None`
    # (no attention output); only the pooled logits are produced here.
    print("KERNEL_OK")
</pallas_src>

<mosaic_0001>
module attributes {stable_mosaic.version = 11 : i64} {
  func.func @kernel(%arg0: i32, %arg1: memref<12xf32, #tpu.memory_space<smem>>, %arg2: memref<1xf32, #tpu.memory_space<smem>>, %arg3: memref<1x128x128xbf16, #tpu.memory_space<vmem>>, %arg4: memref<128x128xf32, #tpu.memory_space<vmem>>, %arg5: memref<128x8xf32, #tpu.memory_space<vmem>>, %arg6: memref<2x128xf32, #tpu.memory_space<vmem>>, %arg7: memref<2x1xf32, #tpu.memory_space<vmem>>, %arg8: memref<8x32xf32, #tpu.memory_space<vmem>>, %arg9: memref<1x32xf32, #tpu.memory_space<vmem>>, %arg10: memref<32x32xf32, #tpu.memory_space<vmem>>, %arg11: memref<1x32xf32, #tpu.memory_space<vmem>>, %arg12: memref<32x32xf32, #tpu.memory_space<vmem>>, %arg13: memref<1x32xf32, #tpu.memory_space<vmem>>, %arg14: memref<1x32xf32, #tpu.memory_space<vmem>>, %arg15: memref<1x32xf32, #tpu.memory_space<vmem>>, %arg16: memref<32x4xf32, #tpu.memory_space<vmem>>, %arg17: memref<1x4xf32, #tpu.memory_space<vmem>>, %arg18: memref<2x4xf32, #tpu.memory_space<vmem>>, %arg19: memref<128x128xf32, #tpu.memory_space<vmem>>, %arg20: memref<128x32xf32, #tpu.memory_space<vmem>>) attributes {dimension_semantics = [#tpu.dimension_semantics<arbitrary>], iteration_bounds = array<i64: 12>, scalar_prefetch = 0 : i64, scratch_operands = 2 : i64, tpu.core_type = #tpu.core_type<tc>, window_params = [{transform_indices = @transform_0, window_bounds = array<i64: 12>}, {transform_indices = @transform_1, window_bounds = array<i64: 1>}, {pipeline_mode = #tpu.pipeline_mode<double_buffered>, transform_indices = @transform_2, window_bounds = array<i64: 1, 128, 128>}, {pipeline_mode = #tpu.pipeline_mode<synchronous>, transform_indices = @transform_3, window_bounds = array<i64: 128, 128>}, {pipeline_mode = #tpu.pipeline_mode<synchronous>, transform_indices = @transform_4, window_bounds = array<i64: 128, 8>}, {pipeline_mode = #tpu.pipeline_mode<synchronous>, transform_indices = @transform_5, window_bounds = array<i64: 2, 128>}, {pipeline_mode = #tpu.pipeline_mode<synchronous>, transform_indices = @transform_6, window_bounds = array<i64: 2, 1>}, {pipeline_mode = #tpu.pipeline_mode<synchronous>, transform_indices = @transform_7, window_bounds = array<i64: 8, 32>}, {pipeline_mode = #tpu.pipeline_mode<synchronous>, transform_indices = @transform_8, window_bounds = array<i64: 1, 32>}, {pipeline_mode = #tpu.pipeline_mode<synchronous>, transform_indices = @transform_9, window_bounds = array<i64: 32, 32>}, {pipeline_mode = #tpu.pipeline_mode<synchronous>, transform_indices = @transform_10, window_bounds = array<i64: 1, 32>}, {pipeline_mode = #tpu.pipeline_mode<synchronous>, transform_indices = @transform_11, window_bounds = array<i64: 32, 32>}, {pipeline_mode = #tpu.pipeline_mode<synchronous>, transform_indices = @transform_12, window_bounds = array<i64: 1, 32>}, {pipeline_mode = #tpu.pipeline_mode<synchronous>, transform_indices = @transform_13, window_bounds = array<i64: 1, 32>}, {pipeline_mode = #tpu.pipeline_mode<synchronous>, transform_indices = @transform_14, window_bounds = array<i64: 1, 32>}, {pipeline_mode = #tpu.pipeline_mode<synchronous>, transform_indices = @transform_15, window_bounds = array<i64: 32, 4>}, {pipeline_mode = #tpu.pipeline_mode<synchronous>, transform_indices = @transform_16, window_bounds = array<i64: 1, 4>}, {pipeline_mode = #tpu.pipeline_mode<synchronous>, transform_indices = @transform_17, window_bounds = array<i64: 2, 4>}]} {
    %c1_i32 = arith.constant 1 : i32
    %0 = arith.muli %arg0, %c1_i32 : i32
    %c0 = arith.constant 0 : index
    %c0_0 = arith.constant 0 : index
    %c0_1 = arith.constant 0 : index
    %1 = vector.load %arg3[%c0, %c0_0, %c0_1] : memref<1x128x128xbf16, #tpu.memory_space<vmem>>, vector<1x128x128xbf16>
    %2 = vector.shape_cast %1 : vector<1x128x128xbf16> to vector<128x128xbf16>
    %3 = arith.extf %2 : vector<128x128xbf16> to vector<128x128xf32>
    %4 = arith.index_cast %0 : i32 to index
    %5 = memref.load %arg1[%4] : memref<12xf32, #tpu.memory_space<smem>>
    %6 = vector.broadcast %5 : f32 to vector<128x128xf32>
    %7 = arith.mulf %3, %6 : vector<128x128xf32>
    %c0_i32 = arith.constant 0 : i32
    %8 = arith.cmpi eq, %arg0, %c0_i32 : i32
    %9 = arith.extui %8 : i1 to i32
    %c0_i32_2 = arith.constant 0 : i32
    %10 = arith.cmpi ne, %9, %c0_i32_2 : i32
    scf.if %10 {
      %c0_6 = arith.constant 0 : index
      %17 = memref.load %arg2[%c0_6] : memref<1xf32, #tpu.memory_space<smem>>
      %18 = vector.broadcast %17 : f32 to vector<128x128xf32>
      %19 = arith.addf %7, %18 : vector<128x128xf32>
      %c0_7 = arith.constant 0 : index
      %c0_8 = arith.constant 0 : index
      %20 = vector.load %arg19[%c0_7, %c0_8] : memref<128x128xf32, #tpu.memory_space<vmem>>, vector<128x128xf32>
      tpu.vector_store %arg19[%c0_7, %c0_8], %19 {strides = array<i32>} : memref<128x128xf32, #tpu.memory_space<vmem>>, vector<128x128xf32>,
      %c0_9 = arith.constant 0 : index
      %c0_10 = arith.constant 0 : index
      %21 = vector.load %arg5[%c0_9, %c0_10] : memref<128x8xf32, #tpu.memory_space<vmem>>, vector<128x8xf32>
      %c0_11 = arith.constant 0 : index
      %c0_12 = arith.constant 0 : index
      %22 = vector.load %arg8[%c0_11, %c0_12] : memref<8x32xf32, #tpu.memory_space<vmem>>, vector<8x32xf32>
      %cst = arith.constant dense<0.000000e+00> : vector<128x32xf32>
      %23 = tpu.matmul %21, %22, %cst {dimension_numbers = #tpu.dot_dimension_numbers<[1], [0], [0], [1], [0, 0, 1, 1], [], []>} : vector<128x8xf32>, vector<8x32xf32>, vector<128x32xf32> -> vector<128x32xf32>
      %c0_13 = arith.constant 0 : index
      %c0_14 = arith.constant 0 : index
      %24 = vector.load %arg20[%c0_13, %c0_14] : memref<128x32xf32, #tpu.memory_space<vmem>>, vector<128x32xf32>
      tpu.vector_store %arg20[%c0_13, %c0_14], %23 {strides = array<i32>} : memref<128x32xf32, #tpu.memory_space<vmem>>, vector<128x32xf32>,
    } else {
    }
    %c0_i32_3 = arith.constant 0 : i32
    %11 = arith.cmpi ne, %arg0, %c0_i32_3 : i32
    %12 = arith.extui %11 : i1 to i32
    %c0_i32_4 = arith.constant 0 : i32
    %13 = arith.cmpi ne, %12, %c0_i32_4 : i32
    scf.if %13 {
      %c0_6 = arith.constant 0 : index
      %c0_7 = arith.constant 0 : index
      %17 = vector.load %arg19[%c0_6, %c0_7] : memref<128x128xf32, #tpu.memory_space<vmem>>, vector<128x128xf32>
      %18 = arith.addf %17, %7 : vector<128x128xf32>
      %c0_8 = arith.constant 0 : index
      %c0_9 = arith.constant 0 : index
      %19 = vector.load %arg19[%c0_8, %c0_9] : memref<128x128xf32, #tpu.memory_space<vmem>>, vector<128x128xf32>
      tpu.vector_store %arg19[%c0_8, %c0_9], %18 {strides = array<i32>} : memref<128x128xf32, #tpu.memory_space<vmem>>, vector<128x128xf32>,
    } else {
    }
    %c11_i32 = arith.constant 11 : i32
    %14 = arith.cmpi eq, %arg0, %c11_i32 : i32
    %15 = arith.extui %14 : i1 to i32
    %c0_i32_5 = arith.constant 0 : i32
    %16 = arith.cmpi ne, %15, %c0_i32_5 : i32
    scf.if %16 {
      %c0_6 = arith.constant 0 : index
      %c0_7 = arith.constant 0 : index
      %17 = vector.load %arg19[%c0_6, %c0_7] : memref<128x128xf32, #tpu.memory_space<vmem>>, vector<128x128xf32>
      %cst = arith.constant 0.000000e+00 : f32
      %18 = vector.broadcast %cst : f32 to vector<128x128xf32>
      %19 = arith.cmpf ogt, %17, %18 : vector<128x128xf32>
      %20 = tpu.iota {dimensions = array<i32: 0>} : vector<128x128xi32>
      %21 = tpu.iota {dimensions = array<i32: 1>} : vector<128x128xi32>
      %22 = arith.cmpi eq, %20, %21 : vector<128x128xi32>
      %c0_8 = arith.constant 0 : index
      %c0_9 = arith.constant 0 : index
      %23 = vector.load %arg4[%c0_8, %c0_9] : memref<128x128xf32, #tpu.memory_space<vmem>>, vector<128x128xf32>
      %cst_10 = arith.constant 1.000000e+00 : f32
      %cst_11 = arith.constant 0.000000e+00 : f32
      %24 = vector.broadcast %cst_10 : f32 to vector<128x128xf32>
      %25 = vector.broadcast %cst_11 : f32 to vector<128x128xf32>
      %26 = arith.select %22, %24, %25 : vector<128x128xi1>, vector<128x128xf32>
      %27 = arith.select %19, %23, %26 : vector<128x128xi1>, vector<128x128xf32>
      %c0_12 = arith.constant 0 : index
      %c0_13 = arith.constant 0 : index
      %28 = vector.load %arg19[%c0_12, %c0_13] : memref<128x128xf32, #tpu.memory_space<vmem>>, vector<128x128xf32>
      tpu.vector_store %arg19[%c0_12, %c0_13], %27 {strides = array<i32>} : memref<128x128xf32, #tpu.memory_space<vmem>>, vector<128x128xf32>,
      %c0_14 = arith.constant 0 : index
      %c0_15 = arith.constant 0 : index
      %29 = vector.load %arg19[%c0_14, %c0_15] : memref<128x128xf32, #tpu.memory_space<vmem>>, vector<128x128xf32>
      %cst_16 = arith.constant dense<0.000000e+00> : vector<128xf32>
      %30 = vector.multi_reduction <add>, %29, %cst_16 [1] : vector<128x128xf32> to vector<128xf32>
      %31 = vector.shape_cast %30 : vector<128xf32> to vector<128x1xf32>
      %cst_17 = arith.constant 0.000000e+00 : f32
      %32 = vector.broadcast %cst_17 : f32 to vector<128x1xf32>
      %33 = arith.cmpf ogt, %31, %32 : vector<128x1xf32>
      %34 = math.rsqrt %31 : vector<128x1xf32>
      %cst_18 = arith.constant 0.000000e+00 : f32
      %35 = vector.broadcast %cst_18 : f32 to vector<128x1xf32>
      %36 = arith.select %33, %34, %35 : vector<128x1xi1>, vector<128x1xf32>
      %c0_19 = arith.constant 0 : index
      %c0_20 = arith.constant 0 : index
      %37 = vector.load %arg19[%c0_19, %c0_20] : memref<128x128xf32, #tpu.memory_space<vmem>>, vector<128x128xf32>
      %38 = arith.truncf %37 : vector<128x128xf32> to vector<128x128xbf16>
      %c0_21 = arith.constant 0 : index
      %c0_22 = arith.constant 0 : index
      %39 = vector.load %arg20[%c0_21, %c0_22] : memref<128x32xf32, #tpu.memory_space<vmem>>, vector<128x32xf32>
      %40 = vector.broadcast %36 : vector<128x1xf32> to vector<128x32xf32>
      %41 = arith.mulf %40, %39 : vector<128x32xf32>
      %42 = arith.truncf %41 : vector<128x32xf32> to vector<128x32xbf16>
      %cst_23 = arith.constant dense<0.000000e+00> : vector<128x32xf32>
      %43 = tpu.matmul %38, %42, %cst_23 {dimension_numbers = #tpu.dot_dimension_numbers<[1], [0], [0], [1], [0, 0, 1, 1], [], []>} : vector<128x128xbf16>, vector<128x32xbf16>, vector<128x32xf32> -> vector<128x32xf32>
      %44 = vector.broadcast %36 : vector<128x1xf32> to vector<128x32xf32>
      %45 = arith.mulf %44, %43 : vector<128x32xf32>
      %c0_24 = arith.constant 0 : index
      %c0_25 = arith.constant 0 : index
      %46 = vector.load %arg9[%c0_24, %c0_25] : memref<1x32xf32, #tpu.memory_space<vmem>>, vector<1x32xf32>
      %47 = vector.broadcast %46 : vector<1x32xf32> to vector<128x32xf32>
      %48 = arith.addf %45, %47 : vector<128x32xf32>
      %cst_26 = arith.constant 0.000000e+00 : f32
      %49 = vector.broadcast %cst_26 : f32 to vector<128x32xf32>
      %50 = arith.maximumf %48, %49 : vector<128x32xf32>
      %c0_27 = arith.constant 0 : index
      %c0_28 = arith.constant 0 : index
      %51 = vector.load %arg10[%c0_27, %c0_28] : memref<32x32xf32, #tpu.memory_space<vmem>>, vector<32x32xf32>
      %cst_29 = arith.constant dense<0.000000e+00> : vector<128x32xf32>
      %52 = tpu.matmul %50, %51, %cst_29 {dimension_numbers = #tpu.dot_dimension_numbers<[1], [0], [0], [1], [0, 0, 1, 1], [], []>} : vector<128x32xf32>, vector<32x32xf32>, vector<128x32xf32> -> vector<128x32xf32>
      %53 = vector.broadcast %36 : vector<128x1xf32> to vector<128x32xf32>
      %54 = arith.mulf %53, %52 : vector<128x32xf32>
      %55 = arith.truncf %54 : vector<128x32xf32> to vector<128x32xbf16>
      %cst_30 = arith.constant dense<0.000000e+00> : vector<128x32xf32>
      %56 = tpu.matmul %38, %55, %cst_30 {dimension_numbers = #tpu.dot_dimension_numbers<[1], [0], [0], [1], [0, 0, 1, 1], [], []>} : vector<128x128xbf16>, vector<128x32xbf16>, vector<128x32xf32> -> vector<128x32xf32>
      %57 = vector.broadcast %36 : vector<128x1xf32> to vector<128x32xf32>
      %58 = arith.mulf %57, %56 : vector<128x32xf32>
      %c0_31 = arith.constant 0 : index
      %c0_32 = arith.constant 0 : index
      %59 = vector.load %arg11[%c0_31, %c0_32] : memref<1x32xf32, #tpu.memory_space<vmem>>, vector<1x32xf32>
      %60 = vector.broadcast %59 : vector<1x32xf32> to vector<128x32xf32>
      %61 = arith.addf %58, %60 : vector<128x32xf32>
      %c0_33 = arith.constant 0 : index
      %c0_34 = arith.constant 0 : index
      %62 = vector.load %arg6[%c0_33, %c0_34] : memref<2x128xf32, #tpu.memory_space<vmem>>, vector<2x128xf32>
      %cst_35 = arith.constant dense<0.000000e+00> : vector<2x32xf32>
      %63 = tpu.matmul %62, %61, %cst_35 {dimension_numbers = #tpu.dot_dimension_numbers<[1], [0], [0], [1], [0, 0, 1, 1], [], []>} : vector<2x128xf32>, vector<128x32xf32>, vector<2x32xf32> -> vector<2x32xf32>
      %c0_36 = arith.constant 0 : index
      %c0_37 = arith.constant 0 : index
      %64 = vector.load %arg7[%c0_36, %c0_37] : memref<2x1xf32, #tpu.memory_space<vmem>>, vector<2x1xf32>
      %65 = vector.broadcast %64 : vector<2x1xf32> to vector<2x32xf32>
      %66 = arith.mulf %63, %65 : vector<2x32xf32>
      %c0_38 = arith.constant 0 : index
      %c0_39 = arith.constant 0 : index
      %67 = vector.load %arg12[%c0_38, %c0_39] : memref<32x32xf32, #tpu.memory_space<vmem>>, vector<32x32xf32>
      %cst_40 = arith.constant dense<0.000000e+00> : vector<2x32xf32>
      %68 = tpu.matmul %66, %67, %cst_40 {dimension_numbers = #tpu.dot_dimension_numbers<[1], [0], [0], [1], [0, 0, 1, 1], [], []>} : vector<2x32xf32>, vector<32x32xf32>, vector<2x32xf32> -> vector<2x32xf32>
      %c0_41 = arith.constant 0 : index
      %c0_42 = arith.constant 0 : index
      %69 = vector.load %arg13[%c0_41, %c0_42] : memref<1x32xf32, #tpu.memory_space<vmem>>, vector<1x32xf32>
      %70 = vector.broadcast %69 : vector<1x32xf32> to vector<2x32xf32>
      %71 = arith.addf %68, %70 : vector<2x32xf32>
      %cst_43 = arith.constant 0.000000e+00 : f32
      %72 = vector.broadcast %cst_43 : f32 to vector<2x32xf32>
      %73 = arith.maximumf %71, %72 : vector<2x32xf32>
      %cst_44 = arith.constant dense<0.000000e+00> : vector<2xf32>
      %74 = vector.multi_reduction <add>, %73, %cst_44 [1] : vector<2x32xf32> to vector<2xf32>
      %75 = vector.shape_cast %74 : vector<2xf32> to vector<2x1xf32>
      %cst_45 = arith.constant 3.200000e+01 : f32
      %76 = vector.broadcast %cst_45 : f32 to vector<2x1xf32>
      %77 = arith.divf %75, %76 : vector<2x1xf32>
      %78 = vector.broadcast %77 : vector<2x1xf32> to vector<2x32xf32>
      %79 = arith.subf %73, %78 : vector<2x32xf32>
      %80 = arith.mulf %79, %79 : vector<2x32xf32>
      %cst_46 = arith.constant dense<0.000000e+00> : vector<2xf32>
      %81 = vector.multi_reduction <add>, %80, %cst_46 [1] : vector<2x32xf32> to vector<2xf32>
      %82 = vector.shape_cast %81 : vector<2xf32> to vector<2x1xf32>
      %cst_47 = arith.constant 3.200000e+01 : f32
      %83 = vector.broadcast %cst_47 : f32 to vector<2x1xf32>
      %84 = arith.divf %82, %83 : vector<2x1xf32>
      %85 = vector.broadcast %77 : vector<2x1xf32> to vector<2x32xf32>
      %86 = arith.subf %73, %85 : vector<2x32xf32>
      %cst_48 = arith.constant 9.99999974E-6 : f32
      %87 = vector.broadcast %cst_48 : f32 to vector<2x1xf32>
      %88 = arith.addf %84, %87 : vector<2x1xf32>
      %89 = math.rsqrt %88 : vector<2x1xf32>
      %90 = vector.broadcast %89 : vector<2x1xf32> to vector<2x32xf32>
      %91 = arith.mulf %86, %90 : vector<2x32xf32>
      %c0_49 = arith.constant 0 : index
      %c0_50 = arith.constant 0 : index
      %92 = vector.load %arg14[%c0_49, %c0_50] : memref<1x32xf32, #tpu.memory_space<vmem>>, vector<1x32xf32>
      %93 = vector.broadcast %92 : vector<1x32xf32> to vector<2x32xf32>
      %94 = arith.mulf %91, %93 : vector<2x32xf32>
      %c0_51 = arith.constant 0 : index
      %c0_52 = arith.constant 0 : index
      %95 = vector.load %arg15[%c0_51, %c0_52] : memref<1x32xf32, #tpu.memory_space<vmem>>, vector<1x32xf32>
      %96 = vector.broadcast %95 : vector<1x32xf32> to vector<2x32xf32>
      %97 = arith.addf %94, %96 : vector<2x32xf32>
      %c0_53 = arith.constant 0 : index
      %c0_54 = arith.constant 0 : index
      %98 = vector.load %arg16[%c0_53, %c0_54] : memref<32x4xf32, #tpu.memory_space<vmem>>, vector<32x4xf32>
      %cst_55 = arith.constant dense<0.000000e+00> : vector<2x4xf32>
      %99 = tpu.matmul %97, %98, %cst_55 {dimension_numbers = #tpu.dot_dimension_numbers<[1], [0], [0], [1], [0, 0, 1, 1], [], []>} : vector<2x32xf32>, vector<32x4xf32>, vector<2x4xf32> -> vector<2x4xf32>
      %c0_56 = arith.constant 0 : index
      %c0_57 = arith.constant 0 : index
      %100 = vector.load %arg17[%c0_56, %c0_57] : memref<1x4xf32, #tpu.memory_space<vmem>>, vector<1x4xf32>
      %101 = vector.broadcast %100 : vector<1x4xf32> to vector<2x4xf32>
      %102 = arith.addf %99, %101 : vector<2x4xf32>
      %c0_58 = arith.constant 0 : index
      %c0_59 = arith.constant 0 : index
      %103 = vector.load %arg18[%c0_58, %c0_59] : memref<2x4xf32, #tpu.memory_space<vmem>>, vector<2x4xf32>
      tpu.vector_store %arg18[%c0_58, %c0_59], %102 {strides = array<i32>} : memref<2x4xf32, #tpu.memory_space<vmem>>, vector<2x4xf32>,
    } else {
    }
    return
  }
  func.func @transform_0(%arg0: i32) -> i32 {
    %c0_i32 = arith.constant 0 : i32
    %c0_i32_0 = arith.constant 0 : i32
    return %c0_i32 : i32
  }
  func.func @transform_1(%arg0: i32) -> i32 {
    %c0_i32 = arith.constant 0 : i32
    %c0_i32_0 = arith.constant 0 : i32
    return %c0_i32 : i32
  }
  func.func @transform_2(%arg0: i32) -> (i32, i32, i32) {
    %c0_i32 = arith.constant 0 : i32
    %c0_i32_0 = arith.constant 0 : i32
    %c0_i32_1 = arith.constant 0 : i32
    return %arg0, %c0_i32, %c0_i32_0 : i32, i32, i32
  }
  func.func @transform_3(%arg0: i32) -> (i32, i32) {
    %c0_i32 = arith.constant 0 : i32
    %c0_i32_0 = arith.constant 0 : i32
    %c0_i32_1 = arith.constant 0 : i32
    return %c0_i32, %c0_i32_0 : i32, i32
  }
  func.func @transform_4(%arg0: i32) -> (i32, i32) {
    %c0_i32 = arith.constant 0 : i32
    %c0_i32_0 = arith.constant 0 : i32
    %c0_i32_1 = arith.constant 0 : i32
    return %c0_i32, %c0_i32_0 : i32, i32
  }
  func.func @transform_5(%arg0: i32) -> (i32, i32) {
    %c0_i32 = arith.constant 0 : i32
    %c0_i32_0 = arith.constant 0 : i32
    %c0_i32_1 = arith.constant 0 : i32
    return %c0_i32, %c0_i32_0 : i32, i32
  }
  func.func @transform_6(%arg0: i32) -> (i32, i32) {
    %c0_i32 = arith.constant 0 : i32
    %c0_i32_0 = arith.constant 0 : i32
    %c0_i32_1 = arith.constant 0 : i32
    return %c0_i32, %c0_i32_0 : i32, i32
  }
  func.func @transform_7(%arg0: i32) -> (i32, i32) {
    %c0_i32 = arith.constant 0 : i32
    %c0_i32_0 = arith.constant 0 : i32
    %c0_i32_1 = arith.constant 0 : i32
    return %c0_i32, %c0_i32_0 : i32, i32
  }
  func.func @transform_8(%arg0: i32) -> (i32, i32) {
    %c0_i32 = arith.constant 0 : i32
    %c0_i32_0 = arith.constant 0 : i32
    %c0_i32_1 = arith.constant 0 : i32
    return %c0_i32, %c0_i32_0 : i32, i32
  }
  func.func @transform_9(%arg0: i32) -> (i32, i32) {
    %c0_i32 = arith.constant 0 : i32
    %c0_i32_0 = arith.constant 0 : i32
    %c0_i32_1 = arith.constant 0 : i32
    return %c0_i32, %c0_i32_0 : i32, i32
  }
  func.func @transform_10(%arg0: i32) -> (i32, i32) {
    %c0_i32 = arith.constant 0 : i32
    %c0_i32_0 = arith.constant 0 : i32
    %c0_i32_1 = arith.constant 0 : i32
    return %c0_i32, %c0_i32_0 : i32, i32
  }
  func.func @transform_11(%arg0: i32) -> (i32, i32) {
    %c0_i32 = arith.constant 0 : i32
    %c0_i32_0 = arith.constant 0 : i32
    %c0_i32_1 = arith.constant 0 : i32
    return %c0_i32, %c0_i32_0 : i32, i32
  }
  func.func @transform_12(%arg0: i32) -> (i32, i32) {
    %c0_i32 = arith.constant 0 : i32
    %c0_i32_0 = arith.constant 0 : i32
    %c0_i32_1 = arith.constant 0 : i32
    return %c0_i32, %c0_i32_0 : i32, i32
  }
  func.func @transform_13(%arg0: i32) -> (i32, i32) {
    %c0_i32 = arith.constant 0 : i32
    %c0_i32_0 = arith.constant 0 : i32
    %c0_i32_1 = arith.constant 0 : i32
    return %c0_i32, %c0_i32_0 : i32, i32
  }
  func.func @transform_14(%arg0: i32) -> (i32, i32) {
    %c0_i32 = arith.constant 0 : i32
    %c0_i32_0 = arith.constant 0 : i32
    %c0_i32_1 = arith.constant 0 : i32
    return %c0_i32, %c0_i32_0 : i32, i32
  }
  func.func @transform_15(%arg0: i32) -> (i32, i32) {
    %c0_i32 = arith.constant 0 : i32
    %c0_i32_0 = arith.constant 0 : i32
    %c0_i32_1 = arith.constant 0 : i32
    return %c0_i32, %c0_i32_0 : i32, i32
  }
  func.func @transform_16(%arg0: i32) -> (i32, i32) {
    %c0_i32 = arith.constant 0 : i32
    %c0_i32_0 = arith.constant 0 : i32
    %c0_i32_1 = arith.constant 0 : i32
    return %c0_i32, %c0_i32_0 : i32, i32
  }
  func.func @transform_17(%arg0: i32) -> (i32, i32) {
    %c0_i32 = arith.constant 0 : i32
    %c0_i32_0 = arith.constant 0 : i32
    %c0_i32_1 = arith.constant 0 : i32
    return %c0_i32, %c0_i32_0 : i32, i32
  }
}

</mosaic_0001>

<bundles_post_ra>
// kernel: tpu_custom_call.1
= control target key start
LH: loop header
LB: loop body
LE: loop exit
PB: predicated region body
PF: predicated region fallthrough
CT: control target
= control target key end

     0   :  { %s3806_s0 = inlined_call_operand.vmem [shape: f32[12], index: 0, kind: input, shape index: {}]   ;;  %s3807_s1 = inlined_call_operand.<no memory space> [shape: f32[1], index: 1, kind: input, shape index: {}]   ;;  %s3808_s2 = inlined_call_operand.hbm [shape: bf16[12,128,128], index: 2, kind: input, shape index: {}]   ;;  %s3809_s3 = inlined_call_operand.vmem [shape: f32[128,128], index: 3, kind: input, shape index: {}]   ;;  %s3810_s4 = inlined_call_operand.vmem [shape: f32[128,8], index: 4, kind: input, shape index: {}]   ;;  %s3811_s5 = inlined_call_operand.hbm [shape: f32[2,128], index: 5, kind: input, shape index: {}]   ;;  %s3812_s6 = inlined_call_operand.vmem [shape: f32[2,1], index: 6, kind: input, shape index: {}]   ;;  %s3813_s7 = inlined_call_operand.hbm [shape: f32[8,32], index: 7, kind: input, shape index: {}]   ;;  %s3814_s8 = inlined_call_operand.hbm [shape: f32[1,32], index: 8, kind: input, shape index: {}]   ;;  %s3815_s9 = inlined_call_operand.vmem [shape: f32[32,32], index: 9, kind: input, shape index: {}]   ;;  %s3816_s10 = inlined_call_operand.hbm [shape: f32[1,32], index: 10, kind: input, shape index: {}]   ;;  %s3817_s11 = inlined_call_operand.vmem [shape: f32[32,32], index: 11, kind: input, shape index: {}]   ;;  %s3818_s12 = inlined_call_operand.hbm [shape: f32[1,32], index: 12, kind: input, shape index: {}]   ;;  %s3819_s13 = inlined_call_operand.vmem [shape: f32[1,32], index: 13, kind: input, shape index: {}]   ;;  %s3820_s14 = inlined_call_operand.vmem [shape: f32[1,32], index: 14, kind: input, shape index: {}]   ;;  %s3821_s15 = inlined_call_operand.vmem [shape: f32[32,4], index: 15, kind: input, shape index: {}]   ;;  %s3822_s16 = inlined_call_operand.vmem [shape: f32[1,4], index: 16, kind: input, shape index: {}]   ;;  %s3823_s17 = inlined_call_operand.hbm [shape: f32[2,4], index: 17, kind: output, shape index: {}]  }
   0x1   :  { %3827 = sst [smem:[#allocation25_spill]] %s3806_s0 }
   0x2   :  { %3828 = sst [smem:[#allocation26_spill]] %s3807_s1 }
   0x3   :  { %3829 = sst [smem:[#allocation27_spill]] %s3811_s5 }
   0x4   :  { %3830 = sst [smem:[#allocation28_spill]] %s3813_s7 }
   0x5   :  { %3831 = sst [smem:[#allocation29_spill]] %s3820_s14 }
   0x6   :  { %3832 = sst [smem:[#allocation30_spill]] %s3822_s16 }
   0x7   :  { %3833 = sst [smem:[#allocation31_spill]] %s3823_s17 }
   0x8   :  { %s3834_s26 = sld [smem:[#allocation26_spill]] }
   0xe   :  { %22 = sst [smem:[#allocation4]] %s3834_s26 }
   0xf   :  { %23 = vsyncpa [#allocation8], 0 }
  0x10   :  { %24 = vsyncpa [#allocation6], 0 }
  0x11   :  { %26 = vsyncpa [#allocation6 + $0x1], 0 }
  0x12   :  { %27 = vsyncpa [#allocation11], 0 }
  0x13   :  { %28 = vsyncpa [#allocation14], 0 }
  0x14   :  { %29 = vsyncpa [#allocation17], 0 }
  0x15   :  { %30 = vsyncpa [#allocation7], 0  ;;  %s3078_s27 = smov 0   ;;  %s3080_s28 = smov 0  }
  0x16   :  { %s3082_s29 = smov 0   ;;  %s3084_s0 = smov 0  }
  0x17 LB: > { %s2972_s30 = smov [#allocation10]   ;;  %s3099_s19 = sadd.s32 4294967295, %s2970_s0   ;;  %s2970_s0 = sphi %s3084_s0, %s3862_s0   ;;  %s2966_s29 = sphi %s3082_s29, %s3861_s29   ;;  %s2962_s28 = sphi %s3080_s28, %s3860_s28   ;;  %s2958_s27 = sphi %s3078_s27, %s3859_s27  }
  0x18   : > { %s457_s18 = sshll.u32 %s2972_s30, 4  ;;  %p2189_p0 = scmp.ge.s32.totalorder %s2970_s0, 1  ;;  %s458_s18 = int_to_ptr.vmem [resolvable:$true] %s457_s18 }
  0x19   : > { %p3824_p1 = scmp.eq.s32.totalorder %s3099_s19, 0  ;;  %p424_p2 = scmp.lt.s32.totalorder %s2970_s0, 13 }
  0x1a   : > { %s3836_s22 = sld [smem:[#allocation25_spill]]  ;;  %s2973_s24 = smov [#allocation13]  }
  0x1b   : > { %p3105_p4 = pnand %p2189_p0, %p424_p2  ;;  %s482_s25 = sshll.u32 %s2973_s24, 4  ;;  %s483_s25 = int_to_ptr.vmem [resolvable:$true] %s482_s25 }
  0x1c   : > { %s2974_s30 = smov [#allocation12]   ;;  %s2730_s21 = scalar_lea.vmem %s458_s18, 32 }
  0x1d   : > { %s3835_s1 = scalar_select %p3105_p4, 1, 0 }
  0x1e   : > { %p2602_p5 = pneg %p3105_p4  ;;  %s3122_s17 = sshll.u32 %s2974_s30, 4  ;;  %s472_s17 = int_to_ptr.vmem [resolvable:$true] %s3122_s17 }
  0x1f   : > { %p2731_p8 = scmp.ne.s32.totalorder %s458_s18, %s2730_s21  ;;  %p2738_p11 = scmp.lt.s32.totalorder %s458_s18, %s458_s18 }
  0x20   : > { %s437_s23 = sshll.u32 %s3836_s22, 4  ;;  %p3118_p6 = pnand %p2602_p5, %p3824_p1  ;;  %s3114_s23 = int_to_ptr.vmem [resolvable:$true] %s437_s23 }
  0x21   : > { %p2739_p12 = scmp.lt.s32.totalorder %s2730_s21, %s2730_s21 }
  0x22   : > { %p3126_p7 = pneg %p3118_p6 }
  0x23   : > { %p2740_p13 = por %p2739_p12, %p2738_p11 }
  0x24   : > { %p2733_p9 = pnand %p2731_p8, %p3126_p7 }
  0x26   : > { %p2734_p10 = pneg %p2733_p9 }
  0x28   : > { %p2741_p0 = pnand %p2740_p13, %p2734_p10 }
  0x2a   : > { %2744 = shalt.err (!%p2741_p0)
}
  0x2b   : > { %s3839_s5 = sld [smem:[#allocation27_spill]]  ;;  %s2756_s30 = scalar_lea.vmem %s483_s25, 16 }
  0x2c   : > { %p2757_p2 = scmp.ne.s32.totalorder %s483_s25, %s2756_s30  ;;  %s2763_s16 = scalar_lea.vmem %s483_s25, 32 }
  0x2d   : > { %p2764_p8 = scmp.lt.s32.totalorder %s483_s25, %s483_s25  ;;  %p2765_p9 = scmp.lt.s32.totalorder %s2763_s16, %s2756_s30 }
  0x2e   : > { %p2759_p5 = pnand %p2757_p2, %p3126_p7 }
  0x2f   : > { %p2766_p1 = por %p2765_p9, %p2764_p8 }
  0x30   : > { %p2760_p3 = pneg %p2759_p5 }
  0x31   : > { %2608 = dma.hbm_to_vmem [thread:$0]  (!%p3118_p6), %s3839_s5, 32, %s458_s18, [#allocation11]  }
  0x32   : > { %p2767_p4 = pnand %p2766_p1, %p2760_p3 }
  0x34   : > { %2770 = shalt.err (!%p2767_p4)
}
  0x35   : > { %2614 = dma.hbm_to_vmem [thread:$0]  (!%p3118_p6), %s3814_s8, 16, %s483_s25, [#allocation14]  }
  0x36   : > { %s2771_s18 = scalar_lea.vmem %s3114_s23, 16  ;;  %p2779_p13 = scmp.lt.s32.totalorder %s3114_s23, %s3114_s23 }
  0x37   : > { %p2772_p10 = scmp.ne.s32.totalorder %s3114_s23, %s2771_s18  ;;  %p2780_p0 = scmp.lt.s32.totalorder %s2771_s18, %s2771_s18 }
  0x39   : > { %p2774_p11 = pnand %p2772_p10, %p3126_p7  ;;  %p2781_p1 = por %p2780_p0, %p2779_p13 }
  0x3b   : > { %p2775_p12 = pneg %p2774_p11 }
  0x3d   : > { %p2782_p3 = pnand %p2781_p1, %p2775_p12 }
  0x3f   : > { %2785 = shalt.err (!%p2782_p3)
}
  0x40   : > { %s2975_s16 = smov [#allocation5]   ;;  %s2976_s14 = smov [#allocation15]  }
  0x41   : > { %2605 = dma.vmem_to_smem (!%p3118_p6), %s3114_s23, 16, %s2975_s16, [#allocation8]  }
  0x42   : > { %s496_s25 = sshll.u32 %s2976_s14, 4  ;;  %s2797_s22 = scalar_lea.vmem %s472_s17, 128  ;;  %s497_s25 = int_to_ptr.vmem [resolvable:$true] %s496_s25 }
  0x43   : > { %p2798_p4 = scmp.ne.s32.totalorder %s472_s17, %s2797_s22  ;;  %p2805_p8 = scmp.lt.s32.totalorder %s472_s17, %s472_s17 }
  0x44   : > { %p2806_p9 = scmp.lt.s32.totalorder %s2797_s22, %s2797_s22 }
  0x45   : > { %p2800_p2 = pnand %p2798_p4, %p3126_p7 }
  0x46   : > { %p2807_p10 = por %p2806_p9, %p2805_p8 }
  0x47   : > { %p2801_p5 = pneg %p2800_p2 }
  0x49   : > { %p2808_p11 = pnand %p2807_p10, %p2801_p5 }
  0x4b   : > { %2811 = shalt.err (!%p2808_p11)
}
  0x4c   : > { %s3840_s7 = sld [smem:[#allocation28_spill]]  ;;  %s2823_s23 = scalar_lea.vmem %s497_s25, 16 }
  0x4d   : > { %p2824_p12 = scmp.ne.s32.totalorder %s497_s25, %s2823_s23  ;;  %s2830_s21 = scalar_lea.vmem %s497_s25, 32 }
  0x4e   : > { %p2831_p1 = scmp.lt.s32.totalorder %s497_s25, %s497_s25  ;;  %p2832_p3 = scmp.lt.s32.totalorder %s2830_s21, %s2823_s23 }
  0x4f   : > { %p2826_p13 = pnand %p2824_p12, %p3126_p7 }
  0x50   : > { %p2833_p4 = por %p2832_p3, %p2831_p1 }
  0x51   : > { %p2827_p0 = pneg %p2826_p13 }
  0x52   : > { %2611 = dma.hbm_to_vmem [thread:$0]  (!%p3118_p6), %s3840_s7, 128, %s472_s17, [#allocation11]  }
  0x53   : > { %p2834_p2 = pnand %p2833_p4, %p2827_p0 }
  0x55   : > { %2837 = shalt.err (!%p2834_p2)
}
  0x56   : > { %2617 = dma.hbm_to_vmem [thread:$0]  (!%p3118_p6), %s3816_s10, 16, %s497_s25, [#allocation14]  }
  0x57   : > { %s2977_s17 = smov [#allocation16]  }
  0x58   : > { %s510_s14 = sshll.u32 %s2977_s17, 4  ;;  %s511_s14 = int_to_ptr.vmem [resolvable:$true] %s510_s14 }
  0x59   : > { %s2849_s22 = scalar_lea.vmem %s511_s14, 16  ;;  %s2856_s24 = scalar_lea.vmem %s511_s14, 32 }
  0x5a   : > { %p2850_p5 = scmp.ne.s32.totalorder %s511_s14, %s2849_s22  ;;  %p2857_p10 = scmp.lt.s32.totalorder %s511_s14, %s511_s14 }
  0x5b   : > { %p2858_p11 = scmp.lt.s32.totalorder %s2856_s24, %s2849_s22 }
  0x5c   : > { %p2852_p8 = pnand %p2850_p5, %p3126_p7 }
  0x5d   : > { %p2859_p12 = por %p2858_p11, %p2857_p10 }
  0x5e   : > { %p2853_p9 = pneg %p2852_p8 }
  0x60   : > { %p2860_p13 = pnand %p2859_p12, %p2853_p9 }
  0x62   : > { %2863 = shalt.err (!%p2860_p13)
}
  0x63   : > { %2620 = dma.hbm_to_vmem [thread:$0]  (!%p3118_p6), %s3818_s12, 16, %s511_s14, [#allocation17]  }
  0x64   : > { %s3176_s20 = sadd.s32 1, %s2970_s0   ;;  %s85_s26 = sadd.s32 1, %s2966_s29 }
  0x65   : > { %s82_s25 = ssub.s32 %s2970_s0, %s3176_s20  ;;  %p92_p7 = scmp.ne.s32.totalorder %s2966_s29, %s2962_s28 }
  0x66   : > { %p83_p0 = scmp.eq.s32.totalorder %s82_s25, 0  ;;  %p93_p1 = scmp.eq.s32.totalorder %s2970_s0, 0 }
  0x67   : > { %p98_p3 = scmp.ne.s32.totalorder %s2962_s28, %s2958_s27  ;;  %p2631_p4 = scmp.lt.s32.totalorder %s2970_s0, 12 }
  0x68   : > { %s3188_s21 = scalar_select %p83_p0, %s2966_s29, %s85_s26  }
  0x69   : > { %p94_p2 = por %p93_p1, %p92_p7  ;;  %p3841_p5 = scmp.eq.s32.totalorder %s3099_s19, 0 }
  0x6a   : > { %s533_s16 = sand.u32 1, %s2966_s29   ;;  %s2255_s17 = sshll.u32 %s2970_s0, 10 }
  0x6b   : > { %p3192_p8 = por %p3841_p5, %p98_p3  ;;  %s2197_s14 = sshll.u32 %s533_s16, 6 }
  0x6c   : > { %s3201_s30 = scalar_lea.hbm %s3808_s2, %s2255_s17  ;;  %s537_s27 = scalar_lea.vmem [#allocation9], %s2197_s14 }
  0x6d   : > { %s3842_s18 = scalar_select %p3192_p8, 1, 0 }
  0x6e   : > { %s544_s23 = sshll.u32 %s537_s27, 4  ;;  %p3203_p6 = pnand %p2631_p4, %p94_p2  ;;  %s3207_s23 = int_to_ptr.vmem [resolvable:$true] %s544_s23 }
  0x6f   : > { %s3209_s25 = scalar_lea.sflag [#allocation6], %s533_s16  ;;  %s2864_s0 = scalar_lea.hbm %s3201_s30, 1024 }
  0x70   : > { %p2865_p9 = scmp.ne.s32.totalorder %s3201_s30, %s2864_s0  ;;  %p2866_p10 = pneg %p3203_p6 }
  0x71   : > { %s2869_s14 = scalar_lea.hbm %s3808_s2, 12288  ;;  %p2870_p13 = scmp.lt.s32.totalorder %s3201_s30, %s3808_s2 }
  0x72   : > { %p2867_p11 = pnand %p2866_p10, %p2865_p9  ;;  %p2871_p7 = scmp.lt.s32.totalorder %s2869_s14, %s2864_s0 }
  0x74   : > { %p2868_p12 = pneg %p2867_p11  ;;  %p2872_p0 = por %p2871_p7, %p2870_p13 }
  0x76   : > { %p2873_p1 = pnand %p2872_p0, %p2868_p12 }
  0x78   : > { %2876 = shalt.err (!%p2873_p1)
}
  0x79   : > { %s2877_s16 = scalar_lea.vmem %s3207_s23, 1024  ;;  %s2978_s5 = smov [#allocation9]  }
  0x7a   : > { %p2878_p3 = scmp.ne.s32.totalorder %s3207_s23, %s2877_s16  ;;  %s2882_s7 = sshll.u32 %s2978_s5, 4  ;;  %s2883_s7 = int_to_ptr.vmem [resolvable:$false] %s2882_s7 }
  0x7b   : > { %s2884_s17 = scalar_lea.vmem %s2883_s7, 2048  ;;  %p2885_p5 = scmp.lt.s32.totalorder %s3207_s23, %s2883_s7 }
  0x7c   : > { %p2880_p4 = pnand %p2878_p3, %p2866_p10  ;;  %p2886_p9 = scmp.lt.s32.totalorder %s2884_s17, %s2877_s16 }
  0x7e   : > { %p2881_p2 = pneg %p2880_p4  ;;  %p2887_p11 = por %p2886_p9, %p2885_p5 }
  0x80   : > { %p2888_p8 = pnand %p2887_p11, %p2881_p2 }
  0x82   : > { %2891 = shalt.err (!%p2888_p8)
}
  0x83   : > { %s2979_s0 = smov 64   ;;  %s2980_s22 = smov 4  }
  0x84   : > { %2624 = dma.hbm_to_vmem [thread:$0]  (!%p3203_p6), %s3201_s30, 1024, %s3207_s23, %s3209_s25, %s2979_s0, %s2979_s0, %s2980_s22  }
  0x85   : > { %p3844_p10 = scmp.ne.s32.totalorder %s3835_s1, 0 }
  0x86   : > { %p3845_p12 = scmp.eq.s32.totalorder (!%p3844_p10), %s3099_s19, 0 }
  0x87   : > { %556 = sbr.rel (%p3844_p10) target bundleno = 2244 (0x8c4), region = 88 }
  0x8c   : > { %2933 = dma.done.wait (%p3845_p12), [#allocation8], 16   ;;  %p3846_p13 = pmov %p3845_p12 }
  0x8d   : > { %s562_s5 = sand.u32 1, %s2962_s28   ;;  %p3847_p8 = scmp.ne.s32.totalorder %s3842_s18, 0 }
  0x8e   : > { %2935 = vsyncadd (%p3846_p13), [#allocation8], 4294967280  ;;  %s2202_s7 = sshll.u32 %s562_s5, 6  ;;  %s563_s14 = scalar_lea.sflag [#allocation6], %s562_s5 }
  0x8f   : > { %s566_s24 = scalar_lea.vmem [#allocation9], %s2202_s7 }
  0x90   : > { %2937 = dma.done.wait (%p3847_p8), %s563_s14, 1024  }
  0x91   : > { %2939 = vsyncadd (%p3847_p8), %s563_s14, 4294966272  ;;  %p3848_p6 = pmov %p3845_p12 }
  0x93   : > { %2941 = dma.done.wait (%p3848_p6), [#allocation11], 160   ;;  %p3849_p7 = pmov %p3848_p6 }
  0x94   : > { %p3850_p0 = pmov %p3848_p6 }
  0x95   : > { %2943 = vsyncadd (%p3849_p7), [#allocation11], 4294967136 }
  0x96   : > { %2945 = dma.done.wait (%p3850_p0), [#allocation14], 32   ;;  %p3851_p1 = pmov %p3850_p0 }
  0x97   : > { %p3852_p3 = pmov %p3850_p0 }
  0x98   : > { %2947 = vsyncadd (%p3851_p1), [#allocation14], 4294967264 }
  0x99   : > { %2949 = dma.done.wait (%p3852_p3), [#allocation17], 16   ;;  %p3853_p4 = pmov %p3850_p0 }
  0x9b   : > { %2951 = vsyncadd (%p3853_p4), [#allocation17], 4294967280 }
  0x9c   : > { %591 = sfence }
  0x9d   : > { %v2257_v0 = vld [vmem:[%s566_s24] sm:$0xff]   ;;  %v2288_v1 = vld [vmem:[%s566_s24 + $0x8] sm:$0xff]   ;;  %v2289_v2 = vld [vmem:[%s566_s24 + $0x10] sm:$0xff]   ;;  %s666_s1 = sld [smem:[#allocation5 + %s3099_s19]]  ;;  %p3854_p2 = scmp.ne.s32.totalorder %s3099_s19, 0 }
  0x9e   : > { %v2290_v3 = vld [vmem:[%s566_s24 + $0x18] sm:$0xff]   ;;  %v2291_v4 = vld [vmem:[%s566_s24 + $0x20] sm:$0xff]   ;;  %v2258_v5 = vunpack.c.l.bf16 %v2257_v0  ;;  %v2292_v6 = vld [vmem:[%s566_s24 + $0x28] sm:$0xff]   ;;  %v2259_v8 = vunpack.c.h.bf16 %v2257_v0  ;;  %v2262_v9 = vunpack.c.l.bf16 %v2288_v1  ;;  %v2263_v10 = vunpack.c.h.bf16 %v2288_v1  ;;  %s688_s18 = sld [smem:[#allocation4]] (!%p3854_p2) }
  0x9f   : > { %v2293_v7 = vld [vmem:[%s566_s24 + $0x30] sm:$0xff]   ;;  %v2266_v11 = vunpack.c.l.bf16 %v2289_v2  ;;  %v2294_v12 = vld [vmem:[%s566_s24 + $0x38] sm:$0xff]   ;;  %v2267_v13 = vunpack.c.h.bf16 %v2289_v2  ;;  %v2270_v14 = vunpack.c.l.bf16 %v2290_v3  ;;  %v2271_v15 = vunpack.c.h.bf16 %v2290_v3 }
  0xa0   : > { %v2274_v16 = vunpack.c.l.bf16 %v2291_v4  ;;  %v2275_v17 = vunpack.c.h.bf16 %v2291_v4  ;;  %v2278_v18 = vunpack.c.l.bf16 %v2292_v6  ;;  %v2279_v19 = vunpack.c.h.bf16 %v2292_v6 }
  0xa1   : > { %v2282_v20 = vunpack.c.l.bf16 %v2293_v7  ;;  %v2283_v21 = vunpack.c.h.bf16 %v2293_v7  ;;  %v2286_v22 = vunpack.c.l.bf16 %v2294_v12  ;;  %v2287_v23 = vunpack.c.h.bf16 %v2294_v12 }
  0xa3   : > { %v667_v24 = vstv %s666_s1  ;;  %687 = sbr.rel (%p3854_p2) target bundleno = 380 (0x17c), region = 120 }
  0xa4   : > { %v3254_v25 = vmul.f32 %v2258_v5, %v667_v24  ;;  %v3256_v26 = vmul.f32 %v2259_v8, %v667_v24  ;;  %v3258_v27 = vmul.f32 %v2262_v9, %v667_v24  ;;  %v3260_v28 = vmul.f32 %v2263_v10, %v667_v24 }
  0xa5   : > { %v3262_v29 = vmul.f32 %v2266_v11, %v667_v24  ;;  %v3264_v30 = vmul.f32 %v2267_v13, %v667_v24  ;;  %v3266_v31 = vmul.f32 %v2270_v14, %v667_v24  ;;  %v3268_v32 = vmul.f32 %v2271_v15, %v667_v24 }
  0xa6   : > { %v3270_v33 = vmul.f32 %v2274_v16, %v667_v24  ;;  %v3272_v34 = vmul.f32 %v2275_v17, %v667_v24  ;;  %v3274_v35 = vmul.f32 %v2278_v18, %v667_v24  ;;  %v3276_v36 = vmul.f32 %v2279_v19, %v667_v24 }
  0xa7   : > { %v3278_v37 = vmul.f32 %v2282_v20, %v667_v24  ;;  %v3280_v38 = vmul.f32 %v2283_v21, %v667_v24  ;;  %v3282_v39 = vmul.f32 %v2286_v22, %v667_v24  ;;  %v3284_v40 = vmul.f32 %v2287_v23, %v667_v24 }
  0xa8   : > { %v738_v41 = vld [vmem:[#allocation12] sm:$0xff]  ;;  %vm739_vm0 = vcmask 64512   ;;  %v724_v46 = vld [vmem:[%s3810_s4 + $0x10] sm:$0xff]  ;;  %v725_v48 = vld [vmem:[%s3810_s4 + $0x18] sm:$0xff]  ;;  %v689_v49 = vstv %s688_s18  ;;  %vm933_vm1 = vcmask 261120  }
  0xa9   : > { %v722_v42 = vld [vmem:[%s3810_s4] sm:$0xff]  ;;  %2391 = vmatprep.subr.mxu0 %v738_v41  ;;  %2570 = vmatprep.subr.mxu1 %v738_v41  ;;  %v723_v44 = vld [vmem:[%s3810_s4 + $0x8] sm:$0xff]  ;;  %v732_v47 = vld [vmem:[%s3810_s4 + $0x50] sm:$0xff]  ;;  %v690_v51 = vadd.f32 %v689_v49, %v3254_v25  ;;  %v691_v52 = vadd.f32 %v689_v49, %v3256_v26  ;;  %v692_v53 = vadd.f32 %v689_v49, %v3258_v27 }
  0xaa   : > { %v730_v43 = vld [vmem:[%s3810_s4 + $0x40] sm:$0xff]  ;;  %v731_v45 = vld [vmem:[%s3810_s4 + $0x48] sm:$0xff]  ;;  %2392 = vmatpush3.msra.mxu0 %v738_v41  ;;  %2571 = vmatpush3.msra.mxu1 %v738_v41  ;;  %v733_v50 = vld [vmem:[%s3810_s4 + $0x58] sm:$0xff]  ;;  %v693_v54 = vadd.f32 %v689_v49, %v3260_v28  ;;  %v694_v56 = vadd.f32 %v689_v49, %v3262_v29  ;;  %v695_v57 = vadd.f32 %v689_v49, %v3264_v30 }
  0xab   : > { %2393 = vmatprep.mubr.msk.f32.mxu0 %vm739_vm0, %v722_v42  ;;  %2405 = vmatprep.mubr.msk.f32.mxu1 %vm739_vm0, %v730_v43  ;;  %v726_v55 = vld [vmem:[%s3810_s4 + $0x20] sm:$0xff]  ;;  %v696_v58 = vadd.f32 %v689_v49, %v3266_v31  ;;  %v697_v59 = vadd.f32 %v689_v49, %v3268_v32  ;;  %v698_v61 = vadd.f32 %v689_v49, %v3270_v33  ;;  %v727_v1 = vld [vmem:[%s3810_s4 + $0x28] sm:$0xff]  ;;  %v728_v7 = vld [vmem:[%s3810_s4 + $0x30] sm:$0xff] }
  0xac   : > { %2394 = vmatmul.mubr.msk.f32.vlgmr.msra.gmra.mxu0 %vm739_vm0, %v723_v44  ;;  %2406 = vmatmul.mubr.msk.f32.vlgmr.msra.gmra.mxu1 %vm739_vm0, %v731_v45  ;;  %v734_v60 = vld [vmem:[%s3810_s4 + $0x60] sm:$0xff]  ;;  %v699_v62 = vadd.f32 %v689_v49, %v3272_v34  ;;  %v700_v63 = vadd.f32 %v689_v49, %v3274_v35  ;;  %v701_v0 = vadd.f32 %v689_v49, %v3276_v36  ;;  %v735_v6 = vld [vmem:[%s3810_s4 + $0x68] sm:$0xff]  ;;  %v736_v8 = vld [vmem:[%s3810_s4 + $0x70] sm:$0xff] }
  0xad   : > { %2396 = vmatprep.mubr.msk.f32.mxu0 %vm739_vm0, %v724_v46  ;;  %2408 = vmatprep.mubr.msk.f32.mxu1 %vm739_vm0, %v732_v47  ;;  %706 = vst [vmem:[#allocation2 + $0x30] sm:$0xff] %v690_v51  ;;  %707 = vst [vmem:[#allocation2] sm:$0xff] %v691_v52  ;;  %v702_v2 = vadd.f32 %v689_v49, %v3278_v37  ;;  %v703_v3 = vadd.f32 %v689_v49, %v3280_v38  ;;  %v729_v9 = vld [vmem:[%s3810_s4 + $0x38] sm:$0xff] }
  0xae   : > { %708 = vst [vmem:[#allocation2 + $0x58] sm:$0xff] %v692_v53  ;;  %709 = vst [vmem:[#allocation2 + $0x18] sm:$0xff] %v693_v54  ;;  %v704_v4 = vadd.f32 %v689_v49, %v3282_v39  ;;  %v705_v5 = vadd.f32 %v689_v49, %v3284_v40  ;;  %v737_v10 = vld [vmem:[%s3810_s4 + $0x78] sm:$0xff] }
  0xaf   : > { %710 = vst [vmem:[#allocation2 + $0x50] sm:$0xff] %v694_v56  ;;  %711 = vst [vmem:[#allocation2 + $0x68] sm:$0xff] %v695_v57 }
  0xb0   : > { %2397 = vmatmul.mubr.msk.f32.gmra.mxu0 %vm739_vm0, %v725_v48  ;;  %2409 = vmatmul.mubr.msk.f32.gmra.mxu1 %vm739_vm0, %v733_v50  ;;  %712 = vst [vmem:[#allocation2 + $0x8] sm:$0xff] %v696_v58  ;;  %713 = vst [vmem:[#allocation2 + $0x48] sm:$0xff] %v697_v59 }
  0xb1   : > { %2399 = vmatprep.mubr.msk.f32.mxu0 %vm739_vm0, %v726_v55  ;;  %714 = vst [vmem:[#allocation2 + $0x40] sm:$0xff] %v698_v61  ;;  %715 = vst [vmem:[#allocation2 + $0x20] sm:$0xff] %v699_v62  ;;  %2411 = vmatprep.mubr.msk.f32.mxu1 %vm739_vm0, %v734_v60 }
  0xb2   : > { %716 = vst [vmem:[#allocation2 + $0x10] sm:$0xff] %v700_v63  ;;  %717 = vst [vmem:[#allocation2 + $0x38] sm:$0xff] %v701_v0 }
  0xb3   : > { %718 = vst [vmem:[#allocation2 + $0x60] sm:$0xff] %v702_v2  ;;  %719 = vst [vmem:[#allocation2 + $0x70] sm:$0xff] %v703_v3 }
  0xb4   : > { %720 = vst [vmem:[#allocation2 + $0x78] sm:$0xff] %v704_v4  ;;  %721 = vst [vmem:[#allocation2 + $0x28] sm:$0xff] %v705_v5  ;;  %2400 = vmatmul.mubr.msk.f32.gmra.mxu0 %vm739_vm0, %v727_v1  ;;  %2412 = vmatmul.mubr.msk.f32.gmra.mxu1 %vm739_vm0, %v735_v6 }
  0xb5   : > { %2402 = vmatprep.mubr.msk.f32.mxu0 %vm739_vm0, %v728_v7  ;;  %2414 = vmatprep.mubr.msk.f32.mxu1 %vm739_vm0, %v736_v8 }
  0xb8   : > { %2403 = vmatmul.mubr.msk.f32.gmra.mxu0 %vm739_vm0, %v729_v9  ;;  %2415 = vmatmul.mubr.msk.f32.gmra.mxu1 %vm739_vm0, %v737_v10 }
 0x16c   : > { %v2395_v11 = vpop.f32.mrf.mxu0  ;;  %v2407_v12 = vpop.f32.mrf.mxu1 }
 0x16d   : > { %935 = vst.msk [vmem:[#allocation3 + $0x8] sm:$0xff] %vm933_vm1, %v2395_v11  ;;  %943 = vst.msk [vmem:[#allocation3 + $0x48] sm:$0xff] %vm933_vm1, %v2407_v12 }
 0x16e   : > { %v854_v13 = vpop.f32.mrf.mxu0  ;;  %v894_v14 = vpop.f32.mrf.mxu1 }
 0x16f   : > { %934 = vst.msk [vmem:[#allocation3] sm:$0xff] %vm933_vm1, %v854_v13  ;;  %942 = vst.msk [vmem:[#allocation3 + $0x40] sm:$0xff] %vm933_vm1, %v894_v14 }
 0x170   : > { %v2398_v15 = vpop.f32.mrf.mxu0  ;;  %v2410_v16 = vpop.f32.mrf.mxu1 }
 0x171   : > { %937 = vst.msk [vmem:[#allocation3 + $0x18] sm:$0xff] %vm933_vm1, %v2398_v15  ;;  %945 = vst.msk [vmem:[#allocation3 + $0x58] sm:$0xff] %vm933_vm1, %v2410_v16 }
 0x172   : > { %v864_v17 = vpop.f32.mrf.mxu0  ;;  %v904_v18 = vpop.f32.mrf.mxu1 }
 0x173   : > { %936 = vst.msk [vmem:[#allocation3 + $0x10] sm:$0xff] %vm933_vm1, %v864_v17  ;;  %944 = vst.msk [vmem:[#allocation3 + $0x50] sm:$0xff] %vm933_vm1, %v904_v18 }
 0x174   : > { %v2401_v19 = vpop.f32.mrf.mxu0  ;;  %v2413_v20 = vpop.f32.mrf.mxu1 }
 0x175   : > { %939 = vst.msk [vmem:[#allocation3 + $0x28] sm:$0xff] %vm933_vm1, %v2401_v19  ;;  %947 = vst.msk [vmem:[#allocation3 + $0x68] sm:$0xff] %vm933_vm1, %v2413_v20 }
 0x176   : > { %v874_v21 = vpop.f32.mrf.mxu0  ;;  %v914_v22 = vpop.f32.mrf.mxu1 }
 0x177   : > { %938 = vst.msk [vmem:[#allocation3 + $0x20] sm:$0xff] %vm933_vm1, %v874_v21  ;;  %946 = vst.msk [vmem:[#allocation3 + $0x60] sm:$0xff] %vm933_vm1, %v914_v22 }
 0x178   : > { %v2404_v23 = vpop.f32.mrf.mxu0  ;;  %v2416_v24 = vpop.f32.mrf.mxu1 }
 0x179   : > { %941 = vst.msk [vmem:[#allocation3 + $0x38] sm:$0xff] %vm933_vm1, %v2404_v23  ;;  %949 = vst.msk [vmem:[#allocation3 + $0x78] sm:$0xff] %vm933_vm1, %v2416_v24 }
 0x17a   : > { %v884_v41 = vpop.f32.mrf.mxu0  ;;  %v924_v42 = vpop.f32.mrf.mxu1 }
 0x17b   : > { %940 = vst.msk [vmem:[#allocation3 + $0x30] sm:$0xff] %vm933_vm1, %v884_v41  ;;  %948 = vst.msk [vmem:[#allocation3 + $0x70] sm:$0xff] %vm933_vm1, %v924_v42 }
 0x17c PF: > { %p3855_p5 = scmp.eq.s32.totalorder %s3099_s19, 0 }
 0x17e   : > { %953 = sbr.rel (%p3855_p5) target bundleno = 398 (0x18e), region = 124 }
 0x183   : > { %v954_v43 = vld [vmem:[#allocation2 + $0x30] sm:$0xff]  ;;  %v955_v44 = vld [vmem:[#allocation2] sm:$0xff]  ;;  %v956_v45 = vld [vmem:[#allocation2 + $0x58] sm:$0xff] }
 0x184   : > { %v970_v46 = vadd.f32 %v954_v43, %v3254_v25  ;;  %v971_v47 = vadd.f32 %v955_v44, %v3256_v26  ;;  %v972_v48 = vadd.f32 %v956_v45, %v3258_v27  ;;  %v957_v49 = vld [vmem:[#allocation2 + $0x18] sm:$0xff]  ;;  %v958_v50 = vld [vmem:[#allocation2 + $0x50] sm:$0xff]  ;;  %v959_v51 = vld [vmem:[#allocation2 + $0x68] sm:$0xff] }
 0x185   : > { %v973_v52 = vadd.f32 %v957_v49, %v3260_v28  ;;  %v974_v53 = vadd.f32 %v958_v50, %v3262_v29  ;;  %v975_v54 = vadd.f32 %v959_v51, %v3264_v30  ;;  %v960_v55 = vld [vmem:[#allocation2 + $0x8] sm:$0xff]  ;;  %v962_v57 = vld [vmem:[#allocation2 + $0x40] sm:$0xff]  ;;  %v964_v59 = vld [vmem:[#allocation2 + $0x10] sm:$0xff] }
 0x186   : > { %v961_v56 = vld [vmem:[#allocation2 + $0x48] sm:$0xff]  ;;  %986 = vst [vmem:[#allocation2 + $0x30] sm:$0xff] %v970_v46  ;;  %987 = vst [vmem:[#allocation2] sm:$0xff] %v971_v47  ;;  %v976_v25 = vadd.f32 %v960_v55, %v3266_v31  ;;  %v978_v27 = vadd.f32 %v962_v57, %v3270_v33  ;;  %v963_v58 = vld [vmem:[#allocation2 + $0x20] sm:$0xff]  ;;  %v980_v29 = vadd.f32 %v964_v59, %v3274_v35 }
 0x187   : > { %988 = vst [vmem:[#allocation2 + $0x58] sm:$0xff] %v972_v48  ;;  %v977_v26 = vadd.f32 %v961_v56, %v3268_v32  ;;  %v965_v60 = vld [vmem:[#allocation2 + $0x38] sm:$0xff]  ;;  %989 = vst [vmem:[#allocation2 + $0x18] sm:$0xff] %v973_v52  ;;  %v979_v28 = vadd.f32 %v963_v58, %v3272_v34  ;;  %v966_v61 = vld [vmem:[#allocation2 + $0x60] sm:$0xff] }
 0x188   : > { %990 = vst [vmem:[#allocation2 + $0x50] sm:$0xff] %v974_v53  ;;  %991 = vst [vmem:[#allocation2 + $0x68] sm:$0xff] %v975_v54  ;;  %v981_v30 = vadd.f32 %v965_v60, %v3276_v36  ;;  %v967_v62 = vld [vmem:[#allocation2 + $0x70] sm:$0xff]  ;;  %v968_v63 = vld [vmem:[#allocation2 + $0x78] sm:$0xff]  ;;  %v982_v31 = vadd.f32 %v966_v61, %v3278_v37 }
 0x189   : > { %992 = vst [vmem:[#allocation2 + $0x8] sm:$0xff] %v976_v25  ;;  %993 = vst [vmem:[#allocation2 + $0x48] sm:$0xff] %v977_v26  ;;  %v983_v32 = vadd.f32 %v967_v62, %v3280_v38  ;;  %v984_v33 = vadd.f32 %v968_v63, %v3282_v39  ;;  %v969_v0 = vld [vmem:[#allocation2 + $0x28] sm:$0xff] }
 0x18a   : > { %994 = vst [vmem:[#allocation2 + $0x40] sm:$0xff] %v978_v27  ;;  %995 = vst [vmem:[#allocation2 + $0x20] sm:$0xff] %v979_v28  ;;  %v985_v34 = vadd.f32 %v969_v0, %v3284_v40 }
 0x18b   : > { %996 = vst [vmem:[#allocation2 + $0x10] sm:$0xff] %v980_v29  ;;  %997 = vst [vmem:[#allocation2 + $0x38] sm:$0xff] %v981_v30 }
 0x18c   : > { %998 = vst [vmem:[#allocation2 + $0x60] sm:$0xff] %v982_v31  ;;  %999 = vst [vmem:[#allocation2 + $0x70] sm:$0xff] %v983_v32 }
 0x18d   : > { %1000 = vst [vmem:[#allocation2 + $0x78] sm:$0xff] %v984_v33  ;;  %1001 = vst [vmem:[#allocation2 + $0x28] sm:$0xff] %v985_v34 }
 0x18e PF: > { %p2226_p9 = scmp.ne.s32.totalorder %s3099_s19, 11 }
 0x18f   : > { %s3856_s27 = sld [smem:[#allocation29_spill]] (!%p2226_p9) }
 0x190   : > { %1005 = sbr.rel (%p2226_p9) target bundleno = 2223 (0x8af), region = 128  ;;  %s3857_s0 = sld [smem:[#allocation30_spill]] (!%p2226_p9) }
 0x195   : > { %v1020_v35 = vld [vmem:[#allocation2 + $0x78] sm:$0xff]  ;;  %v1038_v36 = vlaneseq  ;;  %v1018_v37 = vld [vmem:[#allocation2 + $0x60] sm:$0xff]  ;;  %v1021_v38 = vld [vmem:[#allocation2 + $0x28] sm:$0xff]  ;;  %v2981_v15 = vmov 0.0  }
 0x196   : > { %vm1036_vm2 = vcmp.gt.f32.partialorder %v1020_v35, 0.0  ;;  %v1019_v2 = vld [vmem:[#allocation2 + $0x70] sm:$0xff]  ;;  %v1017_v3 = vld [vmem:[#allocation2 + $0x38] sm:$0xff]  ;;  %vm1034_vm3 = vcmp.gt.f32.partialorder %v1018_v37, 0.0  ;;  %vm1037_vm4 = vcmp.gt.f32.partialorder %v1021_v38, 0.0  ;;  %v1085_v7 = vld [vmem:[%s3809_s3 + $0x60] sm:$0xff] }
 0x197   : > { %v3403_v39 = vshrl.u32 %v1038_v36, 7  ;;  %v3405_v1 = vand.u32 127, %v1038_v36  ;;  %v1087_v40 = vld [vmem:[%s3809_s3 + $0x70] sm:$0xff]  ;;  %vm1035_vm5 = vcmp.gt.f32.partialorder %v1019_v2, 0.0  ;;  %vm1033_vm6 = vcmp.gt.f32.partialorder %v1017_v3, 0.0  ;;  %v1015_v10 = vld [vmem:[#allocation2 + $0x20] sm:$0xff] }
 0x198   : > { %v1016_v4 = vld [vmem:[#allocation2 + $0x10] sm:$0xff]  ;;  %v1088_v11 = vld [vmem:[%s3809_s3 + $0x78] sm:$0xff]  ;;  %v1086_v12 = vld [vmem:[%s3809_s3 + $0x68] sm:$0xff]  ;;  %vm1031_vm8 = vcmp.gt.f32.partialorder %v1015_v10, 0.0 }
 0x199   : > { %v1053_v5 = vadd.s32 112, %v3403_v39  ;;  %v1051_v6 = vadd.s32 96, %v3403_v39  ;;  %v1054_v8 = vadd.s32 120, %v3403_v39  ;;  %v1052_v9 = vadd.s32 104, %v3403_v39  ;;  %v1014_v20 = vld [vmem:[#allocation2 + $0x40] sm:$0xff]  ;;  %v1084_v41 = vld [vmem:[%s3809_s3 + $0x58] sm:$0xff] }
 0x19a   : > { %v1050_v13 = vadd.s32 88, %v3403_v39  ;;  %vm1032_vm7 = vcmp.gt.f32.partialorder %v1016_v4, 0.0  ;;  %v1049_v14 = vadd.s32 80, %v3403_v39  ;;  %v1013_v42 = vld [vmem:[#allocation2 + $0x48] sm:$0xff]  ;;  %v1083_v45 = vld [vmem:[%s3809_s3 + $0x50] sm:$0xff]  ;;  %v1048_v46 = vadd.s32 72, %v3403_v39 }
 0x19b   : > { %vm1071_vm9 = vcmp.eq.s32.totalorder %v1053_v5, %v3405_v1  ;;  %vm1069_vm10 = vcmp.eq.s32.totalorder %v1051_v6, %v3405_v1  ;;  %vm1072_vm11 = vcmp.eq.s32.totalorder %v1054_v8, %v3405_v1  ;;  %vm1070_vm12 = vcmp.eq.s32.totalorder %v1052_v9, %v3405_v1  ;;  %v1082_v48 = vld [vmem:[%s3809_s3 + $0x48] sm:$0xff]  ;;  %v1081_v53 = vld [vmem:[%s3809_s3 + $0x40] sm:$0xff]  ;;  %v1010_v25 = vld [vmem:[#allocation2 + $0x50] sm:$0xff] }
 0x19c   : > { %v1103_v16 = vsel %vm1071_vm9, 1.0, %v2981_v15  ;;  %v1101_v17 = vsel %vm1069_vm10, 1.0, %v2981_v15  ;;  %v1104_v18 = vsel %vm1072_vm11, 1.0, %v2981_v15  ;;  %v1102_v19 = vsel %vm1070_vm12, 1.0, %v2981_v15  ;;  %v1012_v50 = vld [vmem:[#allocation2 + $0x8] sm:$0xff]  ;;  %v1080_v59 = vld [vmem:[%s3809_s3 + $0x38] sm:$0xff] }
 0x19d   : > { %v1119_v21 = vsel %vm1036_vm2, %v1087_v40, %v1103_v16  ;;  %v1117_v22 = vsel %vm1034_vm3, %v1085_v7, %v1101_v17  ;;  %v1120_v23 = vsel %vm1037_vm4, %v1088_v11, %v1104_v18  ;;  %v1118_v24 = vsel %vm1035_vm5, %v1086_v12, %v1102_v19  ;;  %v1011_v54 = vld [vmem:[#allocation2 + $0x68] sm:$0xff]  ;;  %v1009_v60 = vld [vmem:[#allocation2 + $0x18] sm:$0xff]  ;;  %v1079_v63 = vld [vmem:[%s3809_s3 + $0x30] sm:$0xff] }
 0x19e   : > { %1135 = vst [vmem:[#allocation2 + $0x78] sm:$0xff] %v1119_v21  ;;  %1181 = vadd.xlane.f32.xlu0 %v1119_v21  ;;  %1133 = vst [vmem:[#allocation2 + $0x60] sm:$0xff] %v1117_v22  ;;  %1177 = vadd.xlane.f32.xlu1 %v1117_v22  ;;  %v3440_v43 = vpack.c.bf16 %v1120_v23, %v1119_v21  ;;  %v3442_v44 = vpack.c.bf16 %v1118_v24, %v1117_v22  ;;  %vm1030_vm15 = vcmp.gt.f32.partialorder %v1014_v20, 0.0  ;;  %v1008_v30 = vld [vmem:[#allocation2 + $0x58] sm:$0xff]  ;;  %v1078_v33 = vld [vmem:[%s3809_s3 + $0x28] sm:$0xff] }
 0x19f   : > { %1136 = vst [vmem:[#allocation2 + $0x28] sm:$0xff] %v1120_v23  ;;  %1134 = vst [vmem:[#allocation2 + $0x70] sm:$0xff] %v1118_v24  ;;  %vm1068_vm13 = vcmp.eq.s32.totalorder %v1050_v13, %v3405_v1  ;;  %vm1067_vm14 = vcmp.eq.s32.totalorder %v1049_v14, %v3405_v1  ;;  %v1047_v49 = vadd.s32 64, %v3403_v39  ;;  %vm1066_vm0 = vcmp.eq.s32.totalorder %v1048_v46, %v3405_v1  ;;  %v1077_v35 = vld [vmem:[%s3809_s3 + $0x20] sm:$0xff]  ;;  %v1076_v2 = vld [vmem:[%s3809_s3 + $0x18] sm:$0xff] }
 0x1a0   : > { %v1100_v47 = vsel %vm1068_vm13, 1.0, %v2981_v15  ;;  %v1099_v52 = vsel %vm1067_vm14, 1.0, %v2981_v15  ;;  %vm1029_vm1 = vcmp.gt.f32.partialorder %v1013_v42, 0.0  ;;  %v1098_v56 = vsel %vm1066_vm0, 1.0, %v2981_v15  ;;  %v1075_v6 = vld [vmem:[%s3809_s3 + $0x10] sm:$0xff]  ;;  %v1007_v7 = vld [vmem:[#allocation2] sm:$0xff] }
 0x1a1   : > { %v1116_v51 = vsel %vm1033_vm6, %v1084_v41, %v1100_v47  ;;  %v1115_v55 = vsel %vm1032_vm7, %v1083_v45, %v1099_v52  ;;  %vm1065_vm2 = vcmp.eq.s32.totalorder %v1047_v49, %v3405_v1  ;;  %v1046_v57 = vadd.s32 56, %v3403_v39  ;;  %v1006_v8 = vld [vmem:[#allocation2 + $0x30] sm:$0xff]  ;;  %v1073_v16 = vld [vmem:[%s3809_s3] sm:$0xff]  ;;  %v1074_v18 = vld [vmem:[%s3809_s3 + $0x8] sm:$0xff] }
 0x1a2   : > { %1132 = vst [vmem:[#allocation2 + $0x38] sm:$0xff] %v1116_v51  ;;  %1183 = vadd.xlane.f32.xlu0 %v1120_v23  ;;  %1179 = vadd.xlane.f32.xlu1 %v1118_v24  ;;  %1131 = vst [vmem:[#allocation2 + $0x10] sm:$0xff] %v1115_v55  ;;  %v3465_v26 = vpack.c.bf16 %v1116_v51, %v1115_v55  ;;  %v1114_v27 = vsel %vm1031_vm8, %v1082_v48, %v1098_v56  ;;  %v1097_v58 = vsel %vm1065_vm2, 1.0, %v2981_v15 }
 0x1a3   : > { %vm1028_vm3 = vcmp.gt.f32.partialorder %v1012_v50, 0.0  ;;  %1130 = vst [vmem:[#allocation2 + $0x20] sm:$0xff] %v1114_v27  ;;  %v1113_v28 = vsel %vm1030_vm15, %v1081_v53, %v1097_v58  ;;  %vm1064_vm4 = vcmp.eq.s32.totalorder %v1046_v57, %v3405_v1  ;;  %v1045_v29 = vadd.s32 48, %v3403_v39  ;;  %v1254_v57 = vld [vmem:[#allocation3 + $0x68] sm:$0xff] }
 0x1a4   : > { %vm1027_vm5 = vcmp.gt.f32.partialorder %v1011_v54, 0.0  ;;  %1129 = vst [vmem:[#allocation2 + $0x40] sm:$0xff] %v1113_v28  ;;  %v3475_v61 = vpack.c.bf16 %v1114_v27, %v1113_v28  ;;  %v1096_v62 = vsel %vm1064_vm4, 1.0, %v2981_v15  ;;  %v1044_v31 = vadd.s32 40, %v3403_v39  ;;  %v1255_v54 = vld [vmem:[#allocation3 + $0x70] sm:$0xff] }
 0x1a5   : > { %vm1026_vm6 = vcmp.gt.f32.partialorder %v1010_v25, 0.0  ;;  %v1112_v32 = vsel %vm1029_vm1, %v1080_v59, %v1096_v62  ;;  %vm1063_vm7 = vcmp.eq.s32.totalorder %v1045_v29, %v3405_v1  ;;  %v1043_v0 = vadd.s32 32, %v3403_v39  ;;  %v1253_v59 = vld [vmem:[#allocation3 + $0x60] sm:$0xff] }
 0x1a6   : > { %vm1025_vm8 = vcmp.gt.f32.partialorder %v1009_v60, 0.0  ;;  %1175 = vadd.xlane.f32.xlu1 %v1116_v51  ;;  %1173 = vadd.xlane.f32.xlu0 %v1115_v55  ;;  %1128 = vst [vmem:[#allocation2 + $0x48] sm:$0xff] %v1112_v32  ;;  %v1095_v34 = vsel %vm1063_vm7, 1.0, %v2981_v15  ;;  %vm1062_vm9 = vcmp.eq.s32.totalorder %v1044_v31, %v3405_v1  ;;  %v1042_v36 = vadd.s32 24, %v3403_v39  ;;  %v1256_v55 = vld [vmem:[#allocation3 + $0x78] sm:$0xff] }
 0x1a7   : > { %vm1024_vm10 = vcmp.gt.f32.partialorder %v1008_v30, 0.0  ;;  %v1111_v37 = vsel %vm1028_vm3, %v1079_v63, %v1095_v34  ;;  %v1094_v38 = vsel %vm1062_vm9, 1.0, %v2981_v15  ;;  %vm1061_vm11 = vcmp.eq.s32.totalorder %v1043_v0, %v3405_v1  ;;  %v1252_v31 = vld [vmem:[#allocation3 + $0x58] sm:$0xff]  ;;  %v1251_v34 = vld [vmem:[#allocation3 + $0x50] sm:$0xff] }
 0x1a8   : > { %v1041_v3 = vadd.s32 16, %v3403_v39  ;;  %1127 = vst [vmem:[#allocation2 + $0x8] sm:$0xff] %v1111_v37  ;;  %v3501_v40 = vpack.c.bf16 %v1112_v32, %v1111_v37  ;;  %v1110_v4 = vsel %vm1027_vm5, %v1078_v33, %v1094_v38  ;;  %v1093_v5 = vsel %vm1061_vm11, 1.0, %v2981_v15 }
 0x1a9   : > { %vm1060_vm12 = vcmp.eq.s32.totalorder %v1042_v36, %v3405_v1  ;;  %1126 = vst [vmem:[#allocation2 + $0x68] sm:$0xff] %v1110_v4  ;;  %v1109_v9 = vsel %vm1026_vm6, %v1077_v35, %v1093_v5  ;;  %v1040_v14 = vadd.s32 8, %v3403_v39  ;;  %vm1023_vm14 = vcmp.gt.f32.partialorder %v1007_v7, 0.0 }
 0x1aa   : > { %v1092_v10 = vsel %vm1060_vm12, 1.0, %v2981_v15  ;;  %vm1059_vm13 = vcmp.eq.s32.totalorder %v1041_v3, %v3405_v1  ;;  %1171 = vadd.xlane.f32.xlu1 %v1114_v27  ;;  %1169 = vadd.xlane.f32.xlu0 %v1113_v28  ;;  %1125 = vst [vmem:[#allocation2 + $0x50] sm:$0xff] %v1109_v9  ;;  %v3512_v11 = vpack.c.bf16 %v1110_v4, %v1109_v9  ;;  %vm1022_vm15 = vcmp.gt.f32.partialorder %v1006_v8, 0.0  ;;  %v1249_v8 = vld [vmem:[#allocation3 + $0x40] sm:$0xff] }
 0x1ab   : > { %v1108_v12 = vsel %vm1025_vm8, %v1076_v2, %v1092_v10  ;;  %v1091_v13 = vsel %vm1059_vm13, 1.0, %v2981_v15  ;;  %vm1057_vm0 = vcmp.eq.s32.totalorder %v3403_v39, %v3405_v1  ;;  %vm1058_vm1 = vcmp.eq.s32.totalorder %v1040_v14, %v3405_v1 }
 0x1ac   : > { %1124 = vst [vmem:[#allocation2 + $0x18] sm:$0xff] %v1108_v12  ;;  %v1107_v17 = vsel %vm1024_vm10, %v1075_v6, %v1091_v13  ;;  %v1089_v20 = vsel %vm1057_vm0, 1.0, %v2981_v15  ;;  %v1090_v21 = vsel %vm1058_vm1, 1.0, %v2981_v15  ;;  %v1250_v6 = vld [vmem:[#allocation3 + $0x48] sm:$0xff] }
 0x1ad   : > { %1123 = vst [vmem:[#allocation2 + $0x58] sm:$0xff] %v1107_v17  ;;  %v3526_v19 = vpack.c.bf16 %v1108_v12, %v1107_v17  ;;  %v1105_v22 = vsel %vm1022_vm15, %v1073_v16, %v1089_v20  ;;  %v1106_v23 = vsel %vm1023_vm14, %v1074_v18, %v1090_v21  ;;  %v1248_v20 = vld [vmem:[#allocation3 + $0x38] sm:$0xff] }
 0x1ae   : > { %1167 = vadd.xlane.f32.xlu1 %v1112_v32  ;;  %1165 = vadd.xlane.f32.xlu0 %v1111_v37  ;;  %1121 = vst [vmem:[#allocation2 + $0x30] sm:$0xff] %v1105_v22  ;;  %1122 = vst [vmem:[#allocation2] sm:$0xff] %v1106_v23  ;;  %v3531_v39 = vpack.c.bf16 %v1106_v23, %v1105_v22 }
 0x1b0   : > { %2433 = vmatprep.mubr.bf16.mxu0 %v3531_v39 }
 0x1b2   : > { %1163 = vadd.xlane.f32.xlu1 %v1110_v4  ;;  %1161 = vadd.xlane.f32.xlu0 %v1109_v9 }
 0x1b6   : > { %1159 = vadd.xlane.f32.xlu1 %v1108_v12  ;;  %1157 = vadd.xlane.f32.xlu0 %v1107_v17 }
 0x1ba   : > { %1155 = vadd.xlane.f32.xlu1 %v1106_v23  ;;  %1153 = vadd.xlane.f32.xlu0 %v1105_v22  ;;  %v1247_v22 = vld [vmem:[#allocation3 + $0x30] sm:$0xff] }
 0x227   : > { %v1182_v1 = vpop.xlane.xlu0 %1181  ;;  %v1178_v24 = vpop.xlane.xlu1 %1177 }
 0x228   : > { %2685 = vrsqrt.f32 %v1182_v1  ;;  %vm1199_vm2 = vcmp.gt.f32.partialorder %v1182_v1, 0.0  ;;  %vm1197_vm3 = vcmp.gt.f32.partialorder %v1178_v24, 0.0 }
 0x229   : > { %2687 = vrsqrt.f32 %v1178_v24 }
 0x22b   : > { %v1184_v41 = vpop.xlane.xlu0 %1183  ;;  %v1180_v42 = vpop.xlane.xlu1 %1179 }
 0x22c   : > { %2689 = vrsqrt.f32 %v1184_v41  ;;  %vm1200_vm4 = vcmp.gt.f32.partialorder %v1184_v41, 0.0  ;;  %vm1198_vm5 = vcmp.gt.f32.partialorder %v1180_v42, 0.0 }
 0x22d   : > { %2691 = vrsqrt.f32 %v1180_v42 }
 0x22f   : > { %v1176_v45 = vpop.xlane.xlu1 %1175  ;;  %v1174_v46 = vpop.xlane.xlu0 %1173 }
 0x230   : > { %2693 = vrsqrt.f32 %v1176_v45  ;;  %vm1196_vm6 = vcmp.gt.f32.partialorder %v1176_v45, 0.0  ;;  %vm1195_vm7 = vcmp.gt.f32.partialorder %v1174_v46, 0.0 }
 0x231   : > { %2695 = vrsqrt.f32 %v1174_v46  ;;  %v1246_v46 = vld [vmem:[#allocation3 + $0x28] sm:$0xff] }
 0x233   : > { %v1172_v47 = vpop.xlane.xlu1 %1171  ;;  %v1170_v48 = vpop.xlane.xlu0 %1169 }
 0x234   : > { %2697 = vrsqrt.f32 %v1172_v47  ;;  %vm1194_vm8 = vcmp.gt.f32.partialorder %v1172_v47, 0.0  ;;  %vm1193_vm9 = vcmp.gt.f32.partialorder %v1170_v48, 0.0 }
 0x235   : > { %v2686_v49 = vpop.eup %2685  ;;  %2699 = vrsqrt.f32 %v1170_v48  ;;  %v1245_v48 = vld [vmem:[#allocation3 + $0x20] sm:$0xff] }
 0x236   : > { %v2688_v50 = vpop.eup %2687  ;;  %v3538_v53 = vsel %vm1199_vm2, %v2686_v49, 0.0  ;;  %vm1437_vm2 = vcmask 261120  }
 0x237   : > { %v3534_v51 = vpop.xlane.xlu1 %1167  ;;  %v3536_v52 = vpop.xlane.xlu0 %1165  ;;  %v3542_v27 = vsel %vm1197_vm3, %v2688_v50, 0.0  ;;  %v1271_v30 = vmul.f32 %v1255_v54, %v3538_v53  ;;  %vm2982_vm3 = vmmov 0  }
 0x238   : > { %2701 = vrsqrt.f32 %v3534_v51  ;;  %v1269_v0 = vmul.f32 %v1253_v59, %v3542_v27  ;;  %vm1192_vm10 = vcmp.gt.f32.partialorder %v3534_v51, 0.0  ;;  %vm1191_vm11 = vcmp.gt.f32.partialorder %v3536_v52, 0.0 }
 0x239   : > { %v2690_v56 = vpop.eup %2689  ;;  %2703 = vrsqrt.f32 %v3536_v52 }
 0x23a   : > { %v2692_v25 = vpop.eup %2691  ;;  %v3544_v58 = vsel %vm1200_vm4, %v2690_v56, 0.0  ;;  %v1244_v56 = vld [vmem:[#allocation3 + $0x18] sm:$0xff]  ;;  %vm1954_vm4 = vcmask 254976  }
 0x23b   : > { %v3546_v60 = vsel %vm1198_vm5, %v2692_v25, 0.0  ;;  %v3548_v28 = vpop.xlane.xlu1 %1163  ;;  %v3550_v29 = vpop.xlane.xlu0 %1161  ;;  %v1272_v62 = vmul.f32 %v1256_v55, %v3544_v58  ;;  %v1243_v25 = vld [vmem:[#allocation3 + $0x10] sm:$0xff]  ;;  %vm2069_vm5 = vcmask 25600  }
 0x23c   : > { %2705 = vrsqrt.f32 %v3548_v28  ;;  %v1270_v63 = vmul.f32 %v1254_v57, %v3546_v60  ;;  %vm1190_vm12 = vcmp.gt.f32.partialorder %v3548_v28, 0.0  ;;  %vm1189_vm13 = vcmp.gt.f32.partialorder %v3550_v29, 0.0 }
 0x23d   : > { %v2694_v32 = vpop.eup %2693  ;;  %2707 = vrsqrt.f32 %v3550_v29  ;;  %v1280_v33 = vpack.c.bf16 %v1272_v62, %v1271_v30 }
 0x23e   : > { %v2696_v35 = vpop.eup %2695  ;;  %v3558_v36 = vsel %vm1196_vm6, %v2694_v32, 0.0  ;;  %v1279_v3 = vpack.c.bf16 %v1270_v63, %v1269_v0 }
 0x23f   : > { %v3560_v37 = vsel %vm1195_vm7, %v2696_v35, 0.0  ;;  %2417 = vmatprep.subr.bf16.mxu0 %v1280_v33  ;;  %v1160_v38 = vpop.xlane.xlu1 %1159  ;;  %v1158_v2 = vpop.xlane.xlu0 %1157  ;;  %v1268_v4 = vmul.f32 %v1252_v31, %v3558_v36  ;;  %v1242_v31 = vld [vmem:[#allocation3 + $0x8] sm:$0xff] }
 0x240   : > { %2709 = vrsqrt.f32 %v1160_v38  ;;  %2418 = vmatpush3.bf16.msra.mxu0 %v1280_v33  ;;  %v1267_v5 = vmul.f32 %v1251_v34, %v3560_v37  ;;  %vm1188_vm14 = vcmp.gt.f32.partialorder %v1160_v38, 0.0  ;;  %vm1187_vm15 = vcmp.gt.f32.partialorder %v1158_v2, 0.0  ;;  %v1241_v33 = vld [vmem:[#allocation3] sm:$0xff] }
 0x241   : > { %v2698_v7 = vpop.eup %2697  ;;  %2711 = vrsqrt.f32 %v1158_v2  ;;  %2419 = vmatprep.subr.bf16.mxu0 %v1279_v3 }
 0x242   : > { %v2700_v9 = vpop.eup %2699  ;;  %v3564_v10 = vsel %vm1194_vm8, %v2698_v7, 0.0  ;;  %v1278_v16 = vpack.c.bf16 %v1268_v4, %v1267_v5  ;;  %v1436_v5 = vld [vmem:[%s3815_s9 + $0x18] sm:$0xff]  ;;  %v1434_v7 = vld [vmem:[%s3815_s9 + $0x8] sm:$0xff] }
 0x243   : > { %v3566_v12 = vsel %vm1193_vm9, %v2700_v9, 0.0  ;;  %v1156_v13 = vpop.xlane.xlu1 %1155  ;;  %v1154_v14 = vpop.xlane.xlu0 %1153  ;;  %v1266_v17 = vmul.f32 %v1250_v6, %v3564_v10  ;;  %2449 = vmatprep.subr.mxu1 %v1436_v5  ;;  %v1435_v6 = vld [vmem:[%s3815_s9 + $0x10] sm:$0xff] }
 0x244   : > { %2713 = vrsqrt.f32 %v1156_v13  ;;  %2420 = vmatpush3.bf16.msra.mxu0 %v1279_v3  ;;  %v1265_v18 = vmul.f32 %v1249_v8, %v3566_v12  ;;  %vm1186_vm0 = vcmp.gt.f32.partialorder %v1156_v13, 0.0  ;;  %vm1185_vm1 = vcmp.gt.f32.partialorder %v1154_v14, 0.0  ;;  %2450 = vmatpush3.msra.mxu1 %v1436_v5  ;;  %v1433_v8 = vld [vmem:[%s3815_s9] sm:$0xff] }
 0x245   : > { %v2702_v21 = vpop.eup %2701  ;;  %2715 = vrsqrt.f32 %v1154_v14  ;;  %2421 = vmatprep.subr.bf16.mxu0 %v1278_v16  ;;  %2451 = vmatprep.subr.mxu1 %v1435_v6 }
 0x246   : > { %v2704_v23 = vpop.eup %2703  ;;  %v3571_v1 = vsel %vm1192_vm10, %v2702_v21, 0.0  ;;  %v1277_v41 = vpack.c.bf16 %v1266_v17, %v1265_v18  ;;  %2452 = vmatpush3.msra.mxu1 %v1435_v6  ;;  %v3620_v17 = vld [vmem:[#allocation13] ss:$0 sm:$0xff] }
 0x247   : > { %v3574_v24 = vsel %vm1191_vm11, %v2704_v23, 0.0  ;;  %v1264_v42 = vmul.f32 %v1248_v20, %v3571_v1  ;;  %2453 = vmatprep.subr.mxu1 %v1434_v7 }
 0x248   : > { %2422 = vmatpush3.bf16.msra.mxu0 %v1278_v16  ;;  %v1263_v45 = vmul.f32 %v1247_v22, %v3574_v24  ;;  %2454 = vmatpush3.msra.mxu1 %v1434_v7 }
 0x249   : > { %v2706_v47 = vpop.eup %2705  ;;  %2423 = vmatprep.subr.bf16.mxu0 %v1277_v41  ;;  %2455 = vmatprep.subr.mxu1 %v1433_v8 }
 0x24a   : > { %v2708_v49 = vpop.eup %2707  ;;  %v3579_v50 = vsel %vm1190_vm12, %v2706_v47, 0.0  ;;  %v1276_v52 = vpack.c.bf16 %v1264_v42, %v1263_v45  ;;  %2456 = vmatpush3.msra.mxu1 %v1433_v8 }
 0x24b   : > { %v3582_v51 = vsel %vm1189_vm13, %v2708_v49, 0.0  ;;  %v1262_v54 = vmul.f32 %v1246_v46, %v3579_v50 }
 0x24c   : > { %2424 = vmatpush3.bf16.msra.mxu0 %v1277_v41  ;;  %v1261_v55 = vmul.f32 %v1245_v48, %v3582_v51 }
 0x24d   : > { %v2710_v57 = vpop.eup %2709  ;;  %2425 = vmatprep.subr.bf16.mxu0 %v1276_v52 }
 0x24e   : > { %v2712_v59 = vpop.eup %2711  ;;  %v3586_v28 = vsel %vm1188_vm14, %v2710_v57, 0.0  ;;  %v1275_v29 = vpack.c.bf16 %v1262_v54, %v1261_v55 }
 0x24f   : > { %v3588_v30 = vsel %vm1187_vm15, %v2712_v59, 0.0  ;;  %v1260_v62 = vmul.f32 %v1244_v56, %v3586_v28 }
 0x250   : > { %2426 = vmatpush3.bf16.msra.mxu0 %v1276_v52  ;;  %v1259_v63 = vmul.f32 %v1243_v25, %v3588_v30 }
 0x251   : > { %v2714_v32 = vpop.eup %2713  ;;  %2427 = vmatprep.subr.bf16.mxu0 %v1275_v29 }
 0x252   : > { %v2716_v0 = vpop.eup %2715  ;;  %v3592_v34 = vsel %vm1186_vm0, %v2714_v32, 0.0  ;;  %v1274_v38 = vpack.c.bf16 %v1260_v62, %v1259_v63 }
 0x253   : > { %v3594_v35 = vsel %vm1185_vm1, %v2716_v0, 0.0  ;;  %v1258_v2 = vmul.f32 %v1242_v31, %v3592_v34 }
 0x254   : > { %2428 = vmatpush3.bf16.msra.mxu0 %v1275_v29  ;;  %v1257_v3 = vmul.f32 %v1241_v33, %v3594_v35 }
 0x255   : > { %2429 = vmatprep.subr.bf16.mxu0 %v1274_v38 }
 0x256   : > { %v1273_v4 = vpack.c.bf16 %v1258_v2, %v1257_v3 }
 0x258   : > { %2430 = vmatpush3.bf16.msra.mxu0 %v1274_v38 }
 0x259   : > { %2431 = vmatprep.subr.bf16.mxu0 %v1273_v4 }
 0x25c   : > { %2432 = vmatpush3.bf16.msra.mxu0 %v1273_v4 }
 0x25d   : > { %2513 = vmatprep.subr.mxu0 %v2981_v15 }
 0x25f   : > { %2434 = vmatmul.mubr.bf16.vlgmr.msra.gmra.mxu0 %v3526_v19 }
 0x260   : > { %2437 = vmatprep.mubr.bf16.mxu0 %v3512_v11 }
 0x267   : > { %2438 = vmatmul.mubr.bf16.gmra.mxu0 %v3501_v40 }
 0x268   : > { %2441 = vmatprep.mubr.bf16.mxu0 %v3475_v61 }
 0x26f   : > { %2442 = vmatmul.mubr.bf16.gmra.mxu0 %v3465_v26 }
 0x270   : > { %2445 = vmatprep.mubr.bf16.mxu0 %v3442_v44 }
 0x277   : > { %2446 = vmatmul.mubr.bf16.gmra.mxu0 %v3440_v43 }
 0x278   : > { %2545 = vmatprep.mubr.msk.f32.mxu0 %vm2982_vm3, %v2981_v15 }
 0x31f   : > { %v2435_v9 = vpop.f32.mrf.mxu0 }
 0x320   : > { %v1380_v16 = vmul.f32 %v2435_v9, %v3588_v30 }
 0x321   : > { %v1315_v13 = vpop.f32.mrf.mxu0 }
 0x322   : > { %v1378_v14 = vmul.f32 %v1315_v13, %v3594_v35  ;;  %v1403_v42 = vadd.f32 %v3620_v17, %v1380_v16 }
 0x323   : > { %v2436_v18 = vpop.f32.mrf.mxu0 }
 0x324   : > { %v1401_v20 = vadd.f32 %v3620_v17, %v1378_v14  ;;  %v1381_v22 = vmul.f32 %v2436_v18, %v3586_v28  ;;  %v1419_v54 = vmax.f32 %v1403_v42, 0.0 }
 0x325   : > { %v1318_v21 = vpop.f32.mrf.mxu0 }
 0x326   : > { %v1379_v23 = vmul.f32 %v1318_v21, %v3592_v34  ;;  %v1417_v41 = vmax.f32 %v1401_v20, 0.0  ;;  %v1404_v48 = vadd.f32 %v3620_v17, %v1381_v22 }
 0x327   : > { %v2439_v45 = vpop.f32.mrf.mxu0 }
 0x328   : > { %v1402_v46 = vadd.f32 %v3620_v17, %v1379_v23  ;;  %2457 = vmatprep.mubr.msk.f32.mxu1 %vm1437_vm2, %v1417_v41  ;;  %v1384_v55 = vmul.f32 %v2439_v45, %v3574_v24  ;;  %v1420_v59 = vmax.f32 %v1404_v48, 0.0 }
 0x329   : > { %v1331_v47 = vpop.f32.mrf.mxu0 }
 0x32a   : > { %v1418_v49 = vmax.f32 %v1402_v46, 0.0  ;;  %v1382_v52 = vmul.f32 %v1331_v47, %v3582_v51  ;;  %v1407_v31 = vadd.f32 %v3620_v17, %v1384_v55 }
 0x32b   : > { %v2440_v56 = vpop.f32.mrf.mxu0 }
 0x32c   : > { %v1405_v57 = vadd.f32 %v3620_v17, %v1382_v52  ;;  %2458 = vmatmul.mubr.msk.f32.vlgmr.msra.gmra.mxu1 %vm1437_vm2, %v1418_v49  ;;  %v1385_v62 = vmul.f32 %v2440_v56, %v3571_v1  ;;  %v1423_v4 = vmax.f32 %v1407_v31, 0.0 }
 0x32d   : > { %v1334_v25 = vpop.f32.mrf.mxu0  ;;  %2460 = vmatprep.mubr.msk.f32.mxu1 %vm1437_vm2, %v1419_v54 }
 0x32e   : > { %v1421_v29 = vmax.f32 %v1405_v57, 0.0  ;;  %v1383_v63 = vmul.f32 %v1334_v25, %v3579_v50  ;;  %v1408_v38 = vadd.f32 %v3620_v17, %v1385_v62 }
 0x32f   : > { %v2443_v32 = vpop.f32.mrf.mxu0 }
 0x330   : > { %v1406_v33 = vadd.f32 %v3620_v17, %v1383_v63  ;;  %2461 = vmatmul.mubr.msk.f32.gmra.mxu1 %vm1437_vm2, %v1420_v59  ;;  %v1388_v5 = vmul.f32 %v2443_v32, %v3560_v37  ;;  %v1424_v9 = vmax.f32 %v1408_v38, 0.0 }
 0x331   : > { %v1347_v0 = vpop.f32.mrf.mxu0  ;;  %2463 = vmatprep.mubr.msk.f32.mxu1 %vm1437_vm2, %v1421_v29 }
 0x332   : > { %v1422_v2 = vmax.f32 %v1406_v33, 0.0  ;;  %v1386_v3 = vmul.f32 %v1347_v0, %v3566_v12  ;;  %v1411_v18 = vadd.f32 %v3620_v17, %v1388_v5 }
 0x333   : > { %v2444_v6 = vpop.f32.mrf.mxu0 }
 0x334   : > { %v1409_v7 = vadd.f32 %v3620_v17, %v1386_v3  ;;  %2464 = vmatmul.mubr.msk.f32.gmra.mxu1 %vm1437_vm2, %v1422_v2  ;;  %v1389_v14 = vmul.f32 %v2444_v6, %v3558_v36  ;;  %v1427_v45 = vmax.f32 %v1411_v18, 0.0 }
 0x335   : > { %v1350_v8 = vpop.f32.mrf.mxu0  ;;  %2466 = vmatprep.mubr.msk.f32.mxu1 %vm1437_vm2, %v1423_v4 }
 0x336   : > { %v1425_v13 = vmax.f32 %v1409_v7, 0.0  ;;  %v1387_v16 = vmul.f32 %v1350_v8, %v3564_v10  ;;  %v1412_v23 = vadd.f32 %v3620_v17, %v1389_v14 }
 0x337   : > { %v2447_v20 = vpop.f32.mrf.mxu0 }
 0x338   : > { %v1410_v21 = vadd.f32 %v3620_v17, %v1387_v16  ;;  %2467 = vmatmul.mubr.msk.f32.gmra.mxu1 %vm1437_vm2, %v1424_v9  ;;  %v1392_v46 = vmul.f32 %v2447_v20, %v3538_v53  ;;  %v1428_v52 = vmax.f32 %v1412_v23, 0.0 }
 0x339   : > { %v1363_v22 = vpop.f32.mrf.mxu0  ;;  %2469 = vmatprep.mubr.msk.f32.mxu1 %vm1437_vm2, %v1425_v13 }
 0x33a   : > { %v1426_v41 = vmax.f32 %v1410_v21, 0.0  ;;  %v1390_v42 = vmul.f32 %v1363_v22, %v3542_v27  ;;  %v1415_v57 = vadd.f32 %v3620_v17, %v1392_v46 }
 0x33b   : > { %v2448_v47 = vpop.f32.mrf.mxu0 }
 0x33c   : > { %v1413_v48 = vadd.f32 %v3620_v17, %v1390_v42  ;;  %2470 = vmatmul.mubr.msk.f32.gmra.mxu1 %vm1437_vm2, %v1426_v41  ;;  %v1393_v55 = vmul.f32 %v2448_v47, %v3544_v58  ;;  %v1431_v62 = vmax.f32 %v1415_v57, 0.0 }
 0x33d   : > { %v1366_v49 = vpop.f32.mrf.mxu0  ;;  %2472 = vmatprep.mubr.msk.f32.mxu1 %vm1437_vm2, %v1427_v45 }
 0x33e   : > { %v1429_v54 = vmax.f32 %v1413_v48, 0.0  ;;  %v1391_v56 = vmul.f32 %v1366_v49, %v3546_v60  ;;  %v1416_v59 = vadd.f32 %v3620_v17, %v1393_v55 }
 0x340   : > { %v1414_v25 = vadd.f32 %v3620_v17, %v1391_v56  ;;  %2473 = vmatmul.mubr.msk.f32.gmra.mxu1 %vm1437_vm2, %v1428_v52  ;;  %v1432_v63 = vmax.f32 %v1416_v59, 0.0 }
 0x341   : > { %2475 = vmatprep.mubr.msk.f32.mxu1 %vm1437_vm2, %v1429_v54 }
 0x342   : > { %v1430_v29 = vmax.f32 %v1414_v25, 0.0 }
 0x344   : > { %2476 = vmatmul.mubr.msk.f32.gmra.mxu1 %vm1437_vm2, %v1430_v29 }
 0x345   : > { %2478 = vmatprep.mubr.msk.f32.mxu1 %vm1437_vm2, %v1431_v62 }
 0x348   : > { %2479 = vmatmul.mubr.msk.f32.gmra.mxu1 %vm1437_vm2, %v1432_v63 }
 0x349   : > { %2497 = vmatprep.mubr.bf16.mxu1 %v3531_v39 }
 0x3ec   : > { %v2459_v31 = vpop.f32.mrf.mxu1 }
 0x3ed   : > { %v1632_v62 = vmul.f32 %v2459_v31, %v3592_v34 }
 0x3ee   : > { %v1552_v32 = vpop.f32.mrf.mxu1 }
 0x3ef   : > { %v1631_v59 = vmul.f32 %v1552_v32, %v3594_v35 }
 0x3f0   : > { %v2462_v33 = vpop.f32.mrf.mxu1 }
 0x3f1   : > { %v1634_v25 = vmul.f32 %v2462_v33, %v3586_v28  ;;  %v1647_v63 = vpack.c.bf16 %v1632_v62, %v1631_v59 }
 0x3f2   : > { %v1562_v0 = vpop.f32.mrf.mxu1 }
 0x3f3   : > { %v1633_v56 = vmul.f32 %v1562_v0, %v3588_v30 }
 0x3f4   : > { %v2465_v38 = vpop.f32.mrf.mxu1 }
 0x3f5   : > { %v1636_v55 = vmul.f32 %v2465_v38, %v3579_v50  ;;  %v1648_v29 = vpack.c.bf16 %v1634_v25, %v1633_v56 }
 0x3f6   : > { %v1572_v2 = vpop.f32.mrf.mxu1 }
 0x3f7   : > { %v1635_v52 = vmul.f32 %v1572_v2, %v3582_v51 }
 0x3f8   : > { %v2468_v3 = vpop.f32.mrf.mxu1 }
 0x3f9   : > { %v1638_v49 = vmul.f32 %v2468_v3, %v3571_v1  ;;  %v1649_v57 = vpack.c.bf16 %v1636_v55, %v1635_v52  ;;  %v1791_v52 = vld [vmem:[#allocation10] sm:$0x3] }
 0x3fa   : > { %v1582_v4 = vpop.f32.mrf.mxu1  ;;  %v1869_v55 = vld [vmem:[%s3817_s11] sm:$0xff] }
 0x3fb   : > { %v1637_v47 = vmul.f32 %v1582_v4, %v3574_v24 }
 0x3fc   : > { %v2471_v17 = vpop.f32.mrf.mxu1 }
 0x3fd   : > { %v1640_v46 = vmul.f32 %v2471_v17, %v3564_v10  ;;  %v1650_v54 = vpack.c.bf16 %v1638_v49, %v1637_v47 }
 0x3fe   : > { %v1592_v5 = vpop.f32.mrf.mxu1 }
 0x3ff   : > { %v1639_v42 = vmul.f32 %v1592_v5, %v3566_v12 }
 0x400   : > { %v2474_v6 = vpop.f32.mrf.mxu1 }
 0x401   : > { %v1642_v41 = vmul.f32 %v2474_v6, %v3558_v36  ;;  %v1651_v48 = vpack.c.bf16 %v1640_v46, %v1639_v42 }
 0x402   : > { %v1602_v7 = vpop.f32.mrf.mxu1 }
 0x403   : > { %v1641_v22 = vmul.f32 %v1602_v7, %v3560_v37 }
 0x404   : > { %v2477_v8 = vpop.f32.mrf.mxu1 }
 0x405   : > { %v1644_v20 = vmul.f32 %v2477_v8, %v3546_v60  ;;  %v1652_v45 = vpack.c.bf16 %v1642_v41, %v1641_v22  ;;  %v2244_v8 = vld [vmem:[#allocation15] ss:$0 sm:$0xff] }
 0x406   : > { %v1612_v9 = vpop.f32.mrf.mxu1 }
 0x407   : > { %v1643_v16 = vmul.f32 %v1612_v9, %v3542_v27 }
 0x408   : > { %v2480_v13 = vpop.f32.mrf.mxu1 }
 0x409   : > { %v1646_v39 = vmul.f32 %v2480_v13, %v3544_v58  ;;  %v1653_v23 = vpack.c.bf16 %v1644_v20, %v1643_v16 }
 0x40a   : > { %v1622_v14 = vpop.f32.mrf.mxu1 }
 0x40b   : > { %v1645_v18 = vmul.f32 %v1622_v14, %v3538_v53 }
 0x40d   : > { %v1654_v21 = vpack.c.bf16 %v1646_v39, %v1645_v18 }
 0x40f   : > { %2481 = vmatprep.subr.bf16.mxu1 %v1654_v21 }
 0x410   : > { %2482 = vmatpush3.bf16.msra.mxu1 %v1654_v21 }
 0x411   : > { %2483 = vmatprep.subr.bf16.mxu1 %v1653_v23 }
 0x414   : > { %2484 = vmatpush3.bf16.msra.mxu1 %v1653_v23 }
 0x415   : > { %2485 = vmatprep.subr.bf16.mxu1 %v1652_v45 }
 0x418   : > { %2486 = vmatpush3.bf16.msra.mxu1 %v1652_v45 }
 0x419   : > { %2487 = vmatprep.subr.bf16.mxu1 %v1651_v48 }
 0x41c   : > { %2488 = vmatpush3.bf16.msra.mxu1 %v1651_v48 }
 0x41d   : > { %2489 = vmatprep.subr.bf16.mxu1 %v1650_v54 }
 0x420   : > { %2490 = vmatpush3.bf16.msra.mxu1 %v1650_v54  ;;  %v1870_v54 = vld [vmem:[%s3817_s11 + $0x8] sm:$0xff] }
 0x421   : > { %2491 = vmatprep.subr.bf16.mxu1 %v1649_v57 }
 0x424   : > { %2492 = vmatpush3.bf16.msra.mxu1 %v1649_v57 }
 0x425   : > { %2493 = vmatprep.subr.bf16.mxu1 %v1648_v29 }
 0x428   : > { %2494 = vmatpush3.bf16.msra.mxu1 %v1648_v29  ;;  %v2245_v29 = vld [vmem:[#allocation16] ss:$0 sm:$0xff] }
 0x429   : > { %2495 = vmatprep.subr.bf16.mxu1 %v1647_v63 }
 0x42c   : > { %2496 = vmatpush3.bf16.msra.mxu1 %v1647_v63 }
 0x42d   : > { %2559 = vmatprep.subr.mxu1 %v2981_v15 }
 0x42f   : > { %2498 = vmatmul.mubr.bf16.vlgmr.msra.gmra.mxu1 %v3526_v19  ;;  %v1862_v19 = vld [vmem:[%s3812_s6] sm:$0x3] }
 0x430   : > { %2501 = vmatprep.mubr.bf16.mxu1 %v3512_v11 }
 0x437   : > { %2502 = vmatmul.mubr.bf16.gmra.mxu1 %v3501_v40  ;;  %v2983_v40 = vmov 0  }
 0x438   : > { %2505 = vmatprep.mubr.bf16.mxu1 %v3475_v61  ;;  %2684 = vset.pattern.permute.xlu0 %v2983_v40 }
 0x439   : > { %1865 = vperm.xlu0 %2684, %v1862_v19  }
 0x43f   : > { %2506 = vmatmul.mubr.bf16.gmra.mxu1 %v3465_v26 }
 0x440   : > { %2509 = vmatprep.mubr.bf16.mxu1 %v3442_v44 }
 0x447   : > { %2510 = vmatmul.mubr.bf16.gmra.mxu1 %v3440_v43 }
 0x448   : > { %2567 = vmatprep.mubr.msk.f32.mxu1 %vm2982_vm3, %v2981_v15 }
 0x4b4   : > { %v1866_v56 = vpop.permute.xlu0 %1865 }
 0x4ef   : > { %v2499_v61 = vpop.f32.mrf.mxu1 }
 0x4f1   : > { %v3700_v26 = vpop.f32.mrf.mxu1 }
 0x4f3   : > { %v2500_v44 = vpop.f32.mrf.mxu1 }
 0x4f5   : > { %v3702_v11 = vpop.f32.mrf.mxu1 }
 0x4f6   : > { %v1753_v48 = vmul.f32 %v3702_v11, %v3592_v34  ;;  %v1872_v34 = vld [vmem:[%s3817_s11 + $0x18] sm:$0xff] }
 0x4f7   : > { %v2503_v43 = vpop.f32.mrf.mxu1 }
 0x4f8   : > { %v1776_v49 = vadd.f32 %v2244_v8, %v1753_v48 }
 0x4f9   : > { %v1705_v31 = vpop.f32.mrf.mxu1 }
 0x4fa   : > { %v1756_v45 = vmul.f32 %v1705_v31, %v3582_v51 }
 0x4fb   : > { %v2504_v32 = vpop.f32.mrf.mxu1 }
 0x4fc   : > { %v1779_v47 = vadd.f32 %v2244_v8, %v1756_v45 }
 0x4fd   : > { %v1708_v33 = vpop.f32.mrf.mxu1 }
 0x4fe   : > { %v1757_v42 = vmul.f32 %v1708_v33, %v3579_v50  ;;  %v1987_v33 = vld [vmem:[%s3821_s15 + $0x10] sm:$0xff] }
 0x4ff   : > { %v2507_v0 = vpop.f32.mrf.mxu1 }
 0x500   : > { %v1780_v46 = vadd.f32 %v2244_v8, %v1757_v42 }
 0x501   : > { %v1721_v38 = vpop.f32.mrf.mxu1 }
 0x502   : > { %v1760_v22 = vmul.f32 %v1721_v38, %v3566_v12  ;;  %v1985_v38 = vld [vmem:[%s3821_s15] sm:$0xff] }
 0x503   : > { %v2508_v2 = vpop.f32.mrf.mxu1 }
 0x504   : > { %v1763_v18 = vmul.f32 %v2508_v2, %v3558_v36  ;;  %v1759_v36 = vmul.f32 %v2504_v32, %v3571_v1  ;;  %v1783_v41 = vadd.f32 %v2244_v8, %v1760_v22  ;;  %v1755_v1 = vmul.f32 %v2500_v44, %v3586_v28 }
 0x505   : > { %v1724_v3 = vpop.f32.mrf.mxu1  ;;  %v1752_v28 = vmul.f32 %v3700_v26, %v3594_v35  ;;  %v1871_v35 = vld [vmem:[%s3817_s11 + $0x10] sm:$0xff]  ;;  %v1988_v26 = vld [vmem:[%s3821_s15 + $0x18] sm:$0xff] }
 0x506   : > { %v1786_v21 = vadd.f32 %v2244_v8, %v1763_v18  ;;  %v1778_v50 = vadd.f32 %v2244_v8, %v1755_v1  ;;  %2560 = vmatpush3.msra.mxu1 %v1988_v26 }
 0x507   : > { %v2511_v4 = vpop.f32.mrf.mxu1  ;;  %2561 = vmatprep.subr.mxu1 %v2981_v15 }
 0x508   : > { %v1766_v6 = vmul.f32 %v2511_v4, %v3538_v53  ;;  %v1762_v53 = vmul.f32 %v2507_v0, %v3560_v37  ;;  %v1758_v37 = vmul.f32 %v2503_v43, %v3574_v24  ;;  %v1754_v24 = vmul.f32 %v2499_v61, %v3588_v30  ;;  %2562 = vmatpush3.msra.mxu1 %v1987_v33  ;;  %v1986_v0 = vld [vmem:[%s3821_s15 + $0x8] sm:$0xff] }
 0x509   : > { %v1737_v17 = vpop.f32.mrf.mxu1  ;;  %v1775_v30 = vadd.f32 %v2244_v8, %v1752_v28  ;;  %2563 = vmatprep.subr.mxu1 %v2981_v15 }
 0x50a   : > { %v1789_v16 = vadd.f32 %v2244_v8, %v1766_v6  ;;  %v1764_v39 = vmul.f32 %v1737_v17, %v3542_v27  ;;  %v1785_v27 = vadd.f32 %v2244_v8, %v1762_v53  ;;  %v1781_v12 = vadd.f32 %v2244_v8, %v1758_v37  ;;  %2564 = vmatpush3.msra.mxu1 %v1986_v0 }
 0x50b   : > { %v2512_v5 = vpop.f32.mrf.mxu1  ;;  %v1777_v51 = vadd.f32 %v2244_v8, %v1754_v24  ;;  %2565 = vmatprep.subr.mxu1 %v2981_v15 }
 0x50c   : > { %v1767_v7 = vmul.f32 %v2512_v5, %v3544_v58  ;;  %v1787_v58 = vadd.f32 %v2244_v8, %v1764_v39  ;;  %2566 = vmatpush3.msra.mxu1 %v1985_v38  ;;  %v2247_v5 = vld [vmem:[%s3819_s13] ss:$0 sm:$0xff] }
 0x50d   : > { %v1740_v9 = vpop.f32.mrf.mxu1 }
 0x50e   : > { %v1790_v13 = vadd.f32 %v2244_v8, %v1767_v7  ;;  %v1765_v14 = vmul.f32 %v1740_v9, %v3546_v60  ;;  %v1761_v60 = vmul.f32 %v1724_v3, %v3564_v10  ;;  %v1782_v10 = vadd.f32 %v2244_v8, %v1759_v36  ;;  %v2248_v7 = vld [vmem:[%s3856_s27] ss:$0 sm:$0xff] }
 0x510   : > { %2514 = vmatpush3.msra.mxu0 %v1790_v13  ;;  %v1788_v20 = vadd.f32 %v2244_v8, %v1765_v14  ;;  %v1784_v23 = vadd.f32 %v2244_v8, %v1761_v60 }
 0x511   : > { %2515 = vmatprep.subr.mxu0 %v2981_v15 }
 0x512   : > { %2516 = vmatpush3.msra.mxu0 %v1789_v16 }
 0x513   : > { %2517 = vmatprep.subr.mxu0 %v2981_v15 }
 0x514   : > { %2518 = vmatpush3.msra.mxu0 %v1788_v20 }
 0x515   : > { %2519 = vmatprep.subr.mxu0 %v2981_v15 }
 0x516   : > { %2520 = vmatpush3.msra.mxu0 %v1787_v58 }
 0x517   : > { %2521 = vmatprep.subr.mxu0 %v2981_v15 }
 0x518   : > { %2522 = vmatpush3.msra.mxu0 %v1786_v21 }
 0x519   : > { %2523 = vmatprep.subr.mxu0 %v2981_v15 }
 0x51a   : > { %2524 = vmatpush3.msra.mxu0 %v1785_v27 }
 0x51b   : > { %2525 = vmatprep.subr.mxu0 %v2981_v15 }
 0x51c   : > { %2526 = vmatpush3.msra.mxu0 %v1784_v23 }
 0x51d   : > { %2527 = vmatprep.subr.mxu0 %v2981_v15 }
 0x51e   : > { %2528 = vmatpush3.msra.mxu0 %v1783_v41 }
 0x51f   : > { %2529 = vmatprep.subr.mxu0 %v2981_v15 }
 0x520   : > { %2530 = vmatpush3.msra.mxu0 %v1782_v10 }
 0x521   : > { %2531 = vmatprep.subr.mxu0 %v2981_v15 }
 0x522   : > { %2532 = vmatpush3.msra.mxu0 %v1781_v12 }
 0x523   : > { %2533 = vmatprep.subr.mxu0 %v2981_v15 }
 0x524   : > { %2534 = vmatpush3.msra.mxu0 %v1780_v46 }
 0x525   : > { %2535 = vmatprep.subr.mxu0 %v2981_v15 }
 0x526   : > { %2536 = vmatpush3.msra.mxu0 %v1779_v47 }
 0x527   : > { %2537 = vmatprep.subr.mxu0 %v2981_v15 }
 0x528   : > { %2538 = vmatpush3.msra.mxu0 %v1778_v50 }
 0x529   : > { %2539 = vmatprep.subr.mxu0 %v2981_v15 }
 0x52a   : > { %2540 = vmatpush3.msra.mxu0 %v1777_v51 }
 0x52b   : > { %2541 = vmatprep.subr.mxu0 %v2981_v15 }
 0x52c   : > { %2542 = vmatpush3.msra.mxu0 %v1776_v49 }
 0x52d   : > { %2543 = vmatprep.subr.mxu0 %v2981_v15 }
 0x52e   : > { %2544 = vmatpush3.msra.mxu0 %v1775_v30 }
 0x52f   : > { %2546 = vmatmul.mubr.f32.vlgmr.msra.gmra.mxu0 %v1791_v52  ;;  %2548 = vmatprep.subr.mxu0 %v2981_v15 }
 0x530   : > { %2549 = vmatpush3.msra.mxu0 %v1872_v34  ;;  %2556 = vmatprep.mubr.msk.f32.mxu0 %vm2982_vm3, %v2981_v15 }
 0x531   : > { %2550 = vmatprep.subr.mxu0 %v2981_v15 }
 0x532   : > { %2551 = vmatpush3.msra.mxu0 %v1871_v35 }
 0x533   : > { %2552 = vmatprep.subr.mxu0 %v2981_v15 }
 0x534   : > { %2553 = vmatpush3.msra.mxu0 %v1870_v54 }
 0x535   : > { %2554 = vmatprep.subr.mxu0 %v2981_v15  ;;  %v2249_v15 = vld [vmem:[%s3857_s0] ss:$0 sm:$0xff] }
 0x536   : > { %2555 = vmatpush3.msra.mxu0 %v1869_v55 }
 0x5ef   : > { %v1858_v57 = vpop.f32.mrf.mxu0 }
 0x5f0   : > { %v1868_v25 = vmul.f32 %v1866_v56, %v1858_v57 }
 0x5f1   : > { %v2547_v59 = vpop.f32.mrf.mxu0 }
 0x5f2   : > { %2557 = vmatmul.mubr.msk.f32.vlgmr.msra.gmra.mxu0 %vm1437_vm2, %v1868_v25 }
 0x6b2   : > { %v1949_v62 = vpop.f32.mrf.mxu0 }
 0x6b3   : > { %v1950_v63 = vadd.f32 %v2245_v29, %v1949_v62 }
 0x6b4   : > { %v2558_v19 = vpop.f32.mrf.mxu0 }
 0x6b5   : > { %v1953_v40 = vmax.f32 %v1950_v63, 0.0 }
 0x6b7   : > { %v1955_v61 = vsel %vm1954_vm4, %v1953_v40, 0.0 }
 0x6b8   : > { %1956 = vadd.xlane.f32.xlu1 %v1955_v61 }
 0x741   : > { %v1957_v44 = vpop.xlane.xlu1 %1956 }
 0x742   : > { %v1959_v11 = vmul.f32 0.03125, %v1957_v44 }
 0x744   : > { %v1960_v43 = vsub.f32 %v1953_v40, %v1959_v11 }
 0x746   : > { %v1961_v31 = vmul.f32 %v1960_v43, %v1960_v43 }
 0x748   : > { %v1962_v32 = vsel %vm1954_vm4, %v1961_v31, 0.0 }
 0x749   : > { %1963 = vadd.xlane.f32.xlu1 %v1962_v32 }
 0x7d2   : > { %v1964_v2 = vpop.xlane.xlu1 %1963 }
 0x7d3   : > { %v1965_v3 = vmul.f32 0.03125, %v1964_v2 }
 0x7d5   : > { %v1966_v4 = vadd.f32 1e-05, %v1965_v3 }
 0x7d7   : > { %2717 = vrsqrt.f32 %v1966_v4 }
 0x7e4   : > { %v2718_v17 = vpop.eup %2717 }
 0x7e5   : > { %v1968_v6 = vmul.f32 %v2718_v17, %v1960_v43 }
 0x7e7   : > { %v1976_v8 = vmul.f32 %v2247_v5, %v1968_v6 }
 0x7e9   : > { %v1984_v9 = vadd.f32 %v2248_v7, %v1976_v8 }
 0x7eb   : > { %2568 = vmatmul.mubr.msk.f32.vlgmr.msra.gmra.mxu1 %vm1437_vm2, %v1984_v9 }
 0x8ab   : > { %v2065_v13 = vpop.f32.mrf.mxu1 }
 0x8ac   : > { %v2066_v14 = vadd.f32 %v2249_v15, %v2065_v13 }
 0x8ad   : > { %v2569_v16 = vpop.f32.mrf.mxu1 }
 0x8ae   : > { %2070 = vst.msk [vmem:[#allocation18] sm:$0x3] %vm2069_vm5, %v2066_v14 }
 0x8af PF: > { %p2638_p11 = scmp.eq.s32.totalorder %s3099_s19, 11  ;;  %s2984_s22 = smov [#allocation18]  }
 0x8b0   : > { %s2078_s5 = sshll.u32 %s2984_s22, 4  ;;  %s2079_s5 = int_to_ptr.vmem [resolvable:$true] %s2078_s5 }
 0x8b1   : > { %s2892_s7 = scalar_lea.vmem %s2079_s5, 32  ;;  %p2899_p8 = scmp.lt.s32.totalorder %s2079_s5, %s2079_s5 }
 0x8b2   : > { %p2893_p10 = scmp.ne.s32.totalorder %s2079_s5, %s2892_s7  ;;  %p2900_p6 = scmp.lt.s32.totalorder %s2892_s7, %s2892_s7 }
 0x8b4   : > { %p2894_p12 = pnand %p2893_p10, %p2638_p11  ;;  %p2901_p7 = por %p2900_p6, %p2899_p8 }
 0x8b6   : > { %p2895_p13 = pneg %p2894_p12 }
 0x8b8   : > { %p2902_p0 = pnand %p2901_p7, %p2895_p13 }
 0x8ba   : > { %2905 = shalt.err (!%p2902_p0)
}
 0x8bb   : > { %s3858_s1 = sld [smem:[#allocation31_spill]] }
 0x8c1   : > { %2599 = dma.vmem_to_hbm [thread:$0]  (%p2638_p11), %s2079_s5, 32, %s3858_s1, [#allocation7]  }
 0x8c2   : > { %2953 = dma.done.wait (%p2638_p11), [#allocation7], 32  }
 0x8c3   : > { %2955 = vsyncadd (%p2638_p11), [#allocation7], 4294967264 }
 0x8c4 PF: > { %p33_p1 = scmp.ge.s32.totalorder %s3176_s20, 14   ;;  %s3859_s27 = smov %s2962_s28 }
 0x8c5   : > { %s3860_s28 = smov %s2966_s29  ;;  %s3861_s29 = smov %s3188_s21 }
 0x8c6   : > { %s3862_s0 = smov %s3176_s20  ;;  %35 = sbr.rel (!%p33_p1) target bundleno = 23 (0x17), region = 162 }
 0x8cb   :  { %2091 = vsyncpa [#allocation6], 1 }
 0x8cc   :  { %2093 = vsyncpa [#allocation6 + $0x1], 1 }
 0x8cd   :  { %2094 = vsyncpa [#allocation11], 1 }
 0x8ce   :  { %2095 = vsyncpa [#allocation14], 1 }
 0x8cf   :  { %2096 = vsyncpa [#allocation17], 1 }
 0x8d0   :  { %2097 = vsyncpa [#allocation7], 1 }
 0x8d1   :  { %2099 = vsyncpa [#allocation7 + $0x1], 1 }
 0x8d2   :  { %2100 = vsyncpa [#allocation8], 1 }
 0x8d3   :  { %2102 = vsyncpa [#allocation8 + $0x1], 1 }

</bundles_post_ra>
